<compile_context>
chip_gen: v6e
topology: v6e:2x2x1
jax: 0.10.0
libtpu: 0.0.40
codegen_flags: <defaults>
</compile_context>

<pallas_src>
import functools

import jax
import jax.numpy as jnp
from jax import lax
from jax.experimental import pallas as pl
from jax.experimental.pallas import tpu as pltpu


def _round_up(x, m):
    return ((x + m - 1) // m) * m


def _vmem_capacity_bytes():
    """Per-core VMEM capacity; conservative fallback if the query fails."""
    try:
        return int(pltpu.get_tpu_info().vmem_capacity_bytes)
    except Exception:
        return 64 << 20  # v7x per-TC size: safe lower bound on all chips


# ----------------------------------------------------------------------------
# Parameter preparation (hoisted out of the forward path)
# ----------------------------------------------------------------------------
def prepare_params(params, *, compute_dtype=jnp.bfloat16):
    """Pad feature dims to multiples of 128 and cast weights once.

    Biases stay f32 (added to the f32 MXU accumulator); weights and the
    activation input use `compute_dtype` (bf16 = native MXU rate).
    """
    w_in, b_in, w_hid, b_hid, w_out, b_out = params
    in_f, hid = w_in.shape
    n_layers = w_hid.shape[0]
    out_f = w_out.shape[1]

    in_p = _round_up(in_f, 128)
    hid_p = _round_up(hid, 128)
    out_p = _round_up(out_f, 128)
    cd = compute_dtype

    return {
        "w_in": jnp.pad(w_in, ((0, in_p - in_f), (0, hid_p - hid))).astype(cd),
        "b_in": jnp.pad(b_in, ((0, 0), (0, hid_p - hid))).astype(jnp.float32),
        "w_hid": jnp.pad(
            w_hid, ((0, 0), (0, hid_p - hid), (0, hid_p - hid))).astype(cd),
        "b_hid": jnp.pad(
            b_hid, ((0, 0), (0, 0), (0, hid_p - hid))).astype(jnp.float32),
        "w_out": jnp.pad(
            w_out, ((0, hid_p - hid), (0, out_p - out_f))).astype(cd),
        "b_out": jnp.pad(
            b_out, ((0, 0), (0, out_p - out_f))).astype(jnp.float32),
        "dims": (in_f, hid, out_f, n_layers),
        "padded_dims": (in_p, hid_p, out_p),
        "compute_dtype": cd,
    }


# ----------------------------------------------------------------------------
# Kernels
# ----------------------------------------------------------------------------
def _knn_resident_kernel(n_layers, x_ref, w_in_ref, b_in_ref, w_hid_ref,
                         b_hid_ref, w_out_ref, b_out_ref, o_ref):
    # entry: Linear(in -> hidden) + Tanh   (f32 accumulate / bias / tanh)
    h = jnp.tanh(
        jnp.dot(x_ref[...], w_in_ref[...], preferred_element_type=jnp.float32)
        + b_in_ref[...])

    # hidden stack: n_layers x (Linear(hidden -> hidden) + Tanh)
    def body(l, h):
        return jnp.tanh(
            jnp.dot(h.astype(w_hid_ref.dtype), w_hid_ref[l],
                    preferred_element_type=jnp.float32)
            + b_hid_ref[l])

    # Partial unroll for deep stacks: lets the scheduler overlap layer l+1's
    # VMEM weight loads with layer l's MXU drain without code-size blowup.
    unroll = n_layers if n_layers <= 8 else 4
    h = lax.fori_loop(0, n_layers, body, h, unroll=unroll)

    # end: Linear(hidden -> output), no activation
    o_ref[...] = (
        jnp.dot(h.astype(w_out_ref.dtype), w_out_ref[...],
                preferred_element_type=jnp.float32)
        + b_out_ref[...]).astype(o_ref.dtype)


def _knn_stream_kernel(x_ref, w_in_ref, b_in_ref, w_hid_ref, b_hid_ref,
                       w_out_ref, b_out_ref, o_ref, h_ref):
    """Layer-streaming variant: inner grid axis = hidden layer index."""
    l = pl.program_id(1)

    @pl.when(l == 0)
    def _():
        h_ref[...] = jnp.tanh(
            jnp.dot(x_ref[...], w_in_ref[...],
                    preferred_element_type=jnp.float32)
            + b_in_ref[...])

    # hidden layer l (weights streamed per grid step, double-buffered)
    h_ref[...] = jnp.tanh(
        jnp.dot(h_ref[...].astype(w_hid_ref.dtype), w_hid_ref[0],
                preferred_element_type=jnp.float32)
        + b_hid_ref[0])

    @pl.when(l == pl.num_programs(1) - 1)
    def _():
        o_ref[...] = (
            jnp.dot(h_ref[...].astype(w_out_ref.dtype), w_out_ref[...],
                    preferred_element_type=jnp.float32)
            + b_out_ref[...]).astype(o_ref.dtype)


# ----------------------------------------------------------------------------
# Forward wrapper
# ----------------------------------------------------------------------------
def knn_forward(x, prep, *, batch_tile=1024, stream_layers=None):
    in_f, hid, out_f, n_layers = prep["dims"]
    in_p, hid_p, out_p = prep["padded_dims"]
    cd = prep["compute_dtype"]
    csz = jnp.dtype(cd).itemsize
    osz = jnp.dtype(x.dtype).itemsize

    batch = x.shape[0]
    assert x.shape[1] == in_f, "input feature dim mismatch with prepared params"

    # Batch tiling: 8-aligned; prefer >=2 grid steps so the "parallel" axis
    # can be sharded across both v7x TensorCores (harmless on 1-TC chips).
    batch_r = _round_up(batch, 8)
    tb_cap = _round_up(max(pl.cdiv(batch_r, 2), 8), 8) if batch_r >= 16 else 8
    tb = _round_up(min(batch_tile, tb_cap), 8)
    batch_p = _round_up(batch, tb)
    n_btiles = batch_p // tb

    x_p = jnp.pad(x, ((0, batch_p - batch), (0, in_p - in_f))).astype(cd)

    # --- VMEM budgeting (generation-aware) ---
    vmem_cap = _vmem_capacity_bytes()
    w_hid_bytes = n_layers * hid_p * hid_p * csz
    fixed_bytes = csz * (in_p * hid_p + hid_p * out_p) + 4 * (
        (n_layers + 1) * hid_p + out_p)
    io_bytes = 2 * tb * in_p * csz + 2 * tb * out_p * osz
    h_bytes = 4 * tb * hid_p

    if stream_layers is None:
        stream_layers = (w_hid_bytes + fixed_bytes + io_bytes + 2 * h_bytes
                         > int(0.45 * vmem_cap))

    args = (x_p, prep["w_in"], prep["b_in"], prep["w_hid"], prep["b_hid"],
            prep["w_out"], prep["b_out"])

    def run(single_buffer):
        wbuf = 1 if single_buffer else 2

        def wspec(shape):
            imap = lambda *_: (0,) * len(shape)  # constant -> VMEM-resident
            if single_buffer:
                return pl.BlockSpec(shape, imap, pipeline_mode=pl.Buffered(1))
            return pl.BlockSpec(shape, imap)

        if not stream_layers:
            need = wbuf * (w_hid_bytes + fixed_bytes) + io_bytes + 2 * h_bytes
            vmem_limit = int(min(max(int(1.25 * need) + (8 << 20), 32 << 20),
                                 int(0.85 * vmem_cap)))
            return pl.pallas_call(
                functools.partial(_knn_resident_kernel, n_layers),
                out_shape=jax.ShapeDtypeStruct((batch_p, out_p), x.dtype),
                grid=(n_btiles,),
                in_specs=[
                    pl.BlockSpec((tb, in_p), lambda i: (i, 0)),
                    wspec((in_p, hid_p)),
                    wspec((1, hid_p)),
                    wspec((n_layers, hid_p, hid_p)),
                    wspec((n_layers, 1, hid_p)),
                    wspec((hid_p, out_p)),
                    wspec((1, out_p)),
                ],
                out_specs=pl.BlockSpec((tb, out_p), lambda i: (i, 0)),
                compiler_params=pltpu.CompilerParams(
                    dimension_semantics=("parallel",),
                    vmem_limit_bytes=vmem_limit),
            )(*args)
        else:
            per_layer = hid_p * hid_p * csz + 4 * hid_p
            need = wbuf * fixed_bytes + 2 * per_layer + io_bytes + h_bytes
            vmem_limit = int(min(max(int(1.25 * need) + (8 << 20), 32 << 20),
                                 int(0.85 * vmem_cap)))
            return pl.pallas_call(
                _knn_stream_kernel,
                out_shape=jax.ShapeDtypeStruct((batch_p, out_p), x.dtype),
                grid=(n_btiles, n_layers),
                in_specs=[
                    pl.BlockSpec((tb, in_p), lambda b, l: (b, 0)),
                    wspec((in_p, hid_p)),
                    wspec((1, hid_p)),
                    # Streamed per-layer weights: default double buffering
                    # hides layer l+1's DMA behind layer l's matmul.
                    pl.BlockSpec((1, hid_p, hid_p), lambda b, l: (l, 0, 0)),
                    pl.BlockSpec((1, 1, hid_p), lambda b, l: (l, 0, 0)),
                    wspec((hid_p, out_p)),
                    wspec((1, out_p)),
                ],
                out_specs=pl.BlockSpec((tb, out_p), lambda b, l: (b, 0)),
                scratch_shapes=[pltpu.VMEM((tb, hid_p), jnp.float32)],
                compiler_params=pltpu.CompilerParams(
                    dimension_semantics=("parallel", "arbitrary"),
                    vmem_limit_bytes=vmem_limit),
            )(*args)

    try:
        out_padded = run(single_buffer=True)
    except Exception:
        # Fallback if this JAX build rejects pl.Buffered(1) on pallas_call
        # BlockSpecs: accept default (double-buffered) weight operands.
        out_padded = run(single_buffer=False)

    return out_padded[:batch, :out_f]


# ----------------------------------------------------------------------------
# Init + pure-JAX reference
# ----------------------------------------------------------------------------
def init_params(key, input_features, output_features, hidden_units,
                n_hiddenlayers):
    """nn.Linear-style init; weights stored transposed as (in, out)."""
    if n_hiddenlayers < 1:
        raise ValueError("n_hiddenlayers must be at least 1")
    ks = jax.random.split(key, 6)

    def uni(k, shape, fan_in):
        bound = 1.0 / jnp.sqrt(fan_in)
        return jax.random.uniform(k, shape, jnp.float32, -bound, bound)

    w_in = uni(ks[0], (input_features, hidden_units), input_features)
    b_in = uni(ks[1], (1, hidden_units), input_features)
    w_hid = uni(ks[2], (n_hiddenlayers, hidden_units, hidden_units),
                hidden_units)
    b_hid = uni(ks[3], (n_hiddenlayers, 1, hidden_units), hidden_units)
    w_out = uni(ks[4], (hidden_units, output_features), hidden_units)
    b_out = uni(ks[5], (1, output_features), hidden_units)
    return (w_in, b_in, w_hid, b_hid, w_out, b_out)


def knn_reference(x, params, *, n_hiddenlayers):
    w_in, b_in, w_hid, b_hid, w_out, b_out = params
    h = jnp.tanh(x @ w_in + b_in)
    for l in range(n_hiddenlayers):
        h = jnp.tanh(h @ w_hid[l] + b_hid[l])
    return h @ w_out + b_out


if __name__ == "__main__":
    input_features = 16
    output_features = 4
    hidden_units = 8
    n_hiddenlayers = 2
    batch = 30  # not a multiple of the tile -> exercises batch padding

    key = jax.random.PRNGKey(0)
    kx, kp = jax.random.split(key)
    x = jax.random.normal(kx, (batch, input_features), jnp.float32)
    params = init_params(kp, input_features, output_features, hidden_units,
                         n_hiddenlayers)
    ref = knn_reference(x, params, n_hiddenlayers=n_hiddenlayers)

    # 1) f32 compute, resident-weight fast path (tight check).
    prep_f32 = prepare_params(params, compute_dtype=jnp.float32)
    out_f32 = jax.block_until_ready(knn_forward(x, prep_f32))
    assert out_f32.shape == (batch, output_features)
    assert jnp.allclose(out_f32, ref, atol=1e-4, rtol=1e-4)

    # 2) f32 compute, layer-streaming path forced (small tile -> multi-step grid).
    out_stream = jax.block_until_ready(
        knn_forward(x, prep_f32, batch_tile=8, stream_layers=True))
    assert out_stream.shape == (batch, output_features)
    assert jnp.allclose(out_stream, ref, atol=1e-4, rtol=1e-4)

    # 3) bf16 compute (default): looser tolerance vs the f32 reference.
    prep_bf16 = prepare_params(params)  # compute_dtype defaults to bfloat16
    out_bf16 = jax.block_until_ready(knn_forward(x, prep_bf16))
    assert out_bf16.shape == (batch, output_features)
    assert jnp.allclose(out_bf16, ref, atol=1e-1, rtol=5e-2)

    print("KERNEL_OK")
</pallas_src>

<mosaic_0001>
module attributes {stable_mosaic.version = 11 : i64} {
  func.func @_knn_resident_kernel(%arg0: i32, %arg1: memref<16x128xf32, #tpu.memory_space<vmem>>, %arg2: memref<128x128xf32, #tpu.memory_space<vmem>>, %arg3: memref<1x128xf32, #tpu.memory_space<vmem>>, %arg4: memref<2x128x128xf32, #tpu.memory_space<vmem>>, %arg5: memref<2x1x128xf32, #tpu.memory_space<vmem>>, %arg6: memref<128x128xf32, #tpu.memory_space<vmem>>, %arg7: memref<1x128xf32, #tpu.memory_space<vmem>>, %arg8: memref<16x128xf32, #tpu.memory_space<vmem>>) attributes {dimension_semantics = [#tpu.dimension_semantics<parallel>], iteration_bounds = array<i64: 2>, scalar_prefetch = 0 : i64, scratch_operands = 0 : i64, tpu.core_type = #tpu.core_type<tc>, window_params = [{transform_indices = @transform_0, window_bounds = array<i64: 16, 128>}, {pipeline_mode = #tpu.pipeline_mode<synchronous>, transform_indices = @transform_1, window_bounds = array<i64: 128, 128>}, {pipeline_mode = #tpu.pipeline_mode<synchronous>, transform_indices = @transform_2, window_bounds = array<i64: 1, 128>}, {pipeline_mode = #tpu.pipeline_mode<synchronous>, transform_indices = @transform_3, window_bounds = array<i64: 2, 128, 128>}, {pipeline_mode = #tpu.pipeline_mode<synchronous>, transform_indices = @transform_4, window_bounds = array<i64: 2, 1, 128>}, {pipeline_mode = #tpu.pipeline_mode<synchronous>, transform_indices = @transform_5, window_bounds = array<i64: 128, 128>}, {pipeline_mode = #tpu.pipeline_mode<synchronous>, transform_indices = @transform_6, window_bounds = array<i64: 1, 128>}, {transform_indices = @transform_7, window_bounds = array<i64: 16, 128>}]} {
    %c0 = arith.constant 0 : index
    %c0_0 = arith.constant 0 : index
    %0 = vector.load %arg1[%c0, %c0_0] : memref<16x128xf32, #tpu.memory_space<vmem>>, vector<16x128xf32>
    %c0_1 = arith.constant 0 : index
    %c0_2 = arith.constant 0 : index
    %1 = vector.load %arg2[%c0_1, %c0_2] : memref<128x128xf32, #tpu.memory_space<vmem>>, vector<128x128xf32>
    %cst = arith.constant dense<0.000000e+00> : vector<16x128xf32>
    %2 = tpu.matmul %0, %1, %cst {dimension_numbers = #tpu.dot_dimension_numbers<[1], [0], [0], [1], [0, 0, 1, 1], [], []>} : vector<16x128xf32>, vector<128x128xf32>, vector<16x128xf32> -> vector<16x128xf32>
    %c0_3 = arith.constant 0 : index
    %c0_4 = arith.constant 0 : index
    %3 = vector.load %arg3[%c0_3, %c0_4] : memref<1x128xf32, #tpu.memory_space<vmem>>, vector<1x128xf32>
    %4 = vector.broadcast %3 : vector<1x128xf32> to vector<16x128xf32>
    %5 = arith.addf %2, %4 : vector<16x128xf32>
    %6 = math.tanh %5 : vector<16x128xf32>
    %c0_i32 = arith.constant 0 : i32
    %7 = arith.index_cast %c0_i32 : i32 to index
    %c0_5 = arith.constant 0 : index
    %c0_6 = arith.constant 0 : index
    %8 = vector.load %arg4[%7, %c0_5, %c0_6] : memref<2x128x128xf32, #tpu.memory_space<vmem>>, vector<1x128x128xf32>
    %9 = vector.shape_cast %8 : vector<1x128x128xf32> to vector<128x128xf32>
    %cst_7 = arith.constant dense<0.000000e+00> : vector<16x128xf32>
    %10 = tpu.matmul %6, %9, %cst_7 {dimension_numbers = #tpu.dot_dimension_numbers<[1], [0], [0], [1], [0, 0, 1, 1], [], []>} : vector<16x128xf32>, vector<128x128xf32>, vector<16x128xf32> -> vector<16x128xf32>
    %11 = arith.index_cast %c0_i32 : i32 to index
    %c0_8 = arith.constant 0 : index
    %c0_9 = arith.constant 0 : index
    %12 = vector.load %arg5[%11, %c0_8, %c0_9] : memref<2x1x128xf32, #tpu.memory_space<vmem>>, vector<1x1x128xf32>
    %13 = vector.shape_cast %12 : vector<1x1x128xf32> to vector<1x128xf32>
    %14 = vector.broadcast %13 : vector<1x128xf32> to vector<16x128xf32>
    %15 = arith.addf %10, %14 : vector<16x128xf32>
    %16 = math.tanh %15 : vector<16x128xf32>
    %c1_i32 = arith.constant 1 : i32
    %17 = arith.index_cast %c1_i32 : i32 to index
    %c0_10 = arith.constant 0 : index
    %c0_11 = arith.constant 0 : index
    %18 = vector.load %arg4[%17, %c0_10, %c0_11] : memref<2x128x128xf32, #tpu.memory_space<vmem>>, vector<1x128x128xf32>
    %19 = vector.shape_cast %18 : vector<1x128x128xf32> to vector<128x128xf32>
    %cst_12 = arith.constant dense<0.000000e+00> : vector<16x128xf32>
    %20 = tpu.matmul %16, %19, %cst_12 {dimension_numbers = #tpu.dot_dimension_numbers<[1], [0], [0], [1], [0, 0, 1, 1], [], []>} : vector<16x128xf32>, vector<128x128xf32>, vector<16x128xf32> -> vector<16x128xf32>
    %21 = arith.index_cast %c1_i32 : i32 to index
    %c0_13 = arith.constant 0 : index
    %c0_14 = arith.constant 0 : index
    %22 = vector.load %arg5[%21, %c0_13, %c0_14] : memref<2x1x128xf32, #tpu.memory_space<vmem>>, vector<1x1x128xf32>
    %23 = vector.shape_cast %22 : vector<1x1x128xf32> to vector<1x128xf32>
    %24 = vector.broadcast %23 : vector<1x128xf32> to vector<16x128xf32>
    %25 = arith.addf %20, %24 : vector<16x128xf32>
    %26 = math.tanh %25 : vector<16x128xf32>
    %c2_i32 = arith.constant 2 : i32
    %c0_15 = arith.constant 0 : index
    %c0_16 = arith.constant 0 : index
    %27 = vector.load %arg6[%c0_15, %c0_16] : memref<128x128xf32, #tpu.memory_space<vmem>>, vector<128x128xf32>
    %cst_17 = arith.constant dense<0.000000e+00> : vector<16x128xf32>
    %28 = tpu.matmul %26, %27, %cst_17 {dimension_numbers = #tpu.dot_dimension_numbers<[1], [0], [0], [1], [0, 0, 1, 1], [], []>} : vector<16x128xf32>, vector<128x128xf32>, vector<16x128xf32> -> vector<16x128xf32>
    %c0_18 = arith.constant 0 : index
    %c0_19 = arith.constant 0 : index
    %29 = vector.load %arg7[%c0_18, %c0_19] : memref<1x128xf32, #tpu.memory_space<vmem>>, vector<1x128xf32>
    %30 = vector.broadcast %29 : vector<1x128xf32> to vector<16x128xf32>
    %31 = arith.addf %28, %30 : vector<16x128xf32>
    %c0_20 = arith.constant 0 : index
    %c0_21 = arith.constant 0 : index
    %32 = vector.load %arg8[%c0_20, %c0_21] : memref<16x128xf32, #tpu.memory_space<vmem>>, vector<16x128xf32>
    tpu.vector_store %arg8[%c0_20, %c0_21], %31 {strides = array<i32>} : memref<16x128xf32, #tpu.memory_space<vmem>>, vector<16x128xf32>,
    return
  }
  func.func @transform_0(%arg0: i32) -> (i32, i32) {
    %c0_i32 = arith.constant 0 : i32
    %c0_i32_0 = arith.constant 0 : i32
    return %arg0, %c0_i32 : i32, i32
  }
  func.func @transform_1(%arg0: i32) -> (i32, i32) {
    %c0_i32 = arith.constant 0 : i32
    %c0_i32_0 = arith.constant 0 : i32
    %c0_i32_1 = arith.constant 0 : i32
    return %c0_i32, %c0_i32_0 : i32, i32
  }
  func.func @transform_2(%arg0: i32) -> (i32, i32) {
    %c0_i32 = arith.constant 0 : i32
    %c0_i32_0 = arith.constant 0 : i32
    %c0_i32_1 = arith.constant 0 : i32
    return %c0_i32, %c0_i32_0 : i32, i32
  }
  func.func @transform_3(%arg0: i32) -> (i32, i32, i32) {
    %c0_i32 = arith.constant 0 : i32
    %c0_i32_0 = arith.constant 0 : i32
    %c0_i32_1 = arith.constant 0 : i32
    %c0_i32_2 = arith.constant 0 : i32
    return %c0_i32, %c0_i32_0, %c0_i32_1 : i32, i32, i32
  }
  func.func @transform_4(%arg0: i32) -> (i32, i32, i32) {
    %c0_i32 = arith.constant 0 : i32
    %c0_i32_0 = arith.constant 0 : i32
    %c0_i32_1 = arith.constant 0 : i32
    %c0_i32_2 = arith.constant 0 : i32
    return %c0_i32, %c0_i32_0, %c0_i32_1 : i32, i32, i32
  }
  func.func @transform_5(%arg0: i32) -> (i32, i32) {
    %c0_i32 = arith.constant 0 : i32
    %c0_i32_0 = arith.constant 0 : i32
    %c0_i32_1 = arith.constant 0 : i32
    return %c0_i32, %c0_i32_0 : i32, i32
  }
  func.func @transform_6(%arg0: i32) -> (i32, i32) {
    %c0_i32 = arith.constant 0 : i32
    %c0_i32_0 = arith.constant 0 : i32
    %c0_i32_1 = arith.constant 0 : i32
    return %c0_i32, %c0_i32_0 : i32, i32
  }
  func.func @transform_7(%arg0: i32) -> (i32, i32) {
    %c0_i32 = arith.constant 0 : i32
    %c0_i32_0 = arith.constant 0 : i32
    return %arg0, %c0_i32 : i32, i32
  }
}

module attributes {stable_mosaic.version = 11 : i64} {
  func.func @_knn_resident_kernel(%arg0: i32, %arg1: memref<16x128xf32, #tpu.memory_space<vmem>>, %arg2: memref<128x128xf32, #tpu.memory_space<vmem>>, %arg3: memref<1x128xf32, #tpu.memory_space<vmem>>, %arg4: memref<2x128x128xf32, #tpu.memory_space<vmem>>, %arg5: memref<2x1x128xf32, #tpu.memory_space<vmem>>, %arg6: memref<128x128xf32, #tpu.memory_space<vmem>>, %arg7: memref<1x128xf32, #tpu.memory_space<vmem>>, %arg8: memref<16x128xf32, #tpu.memory_space<vmem>>) attributes {dimension_semantics = [#tpu.dimension_semantics<parallel>], iteration_bounds = array<i64: 2>, scalar_prefetch = 0 : i64, scratch_operands = 0 : i64, tpu.core_type = #tpu.core_type<tc>, window_params = [{transform_indices = @transform_0, window_bounds = array<i64: 16, 128>}, {pipeline_mode = #tpu.pipeline_mode<synchronous>, transform_indices = @transform_1, window_bounds = array<i64: 128, 128>}, {pipeline_mode = #tpu.pipeline_mode<synchronous>, transform_indices = @transform_2, window_bounds = array<i64: 1, 128>}, {pipeline_mode = #tpu.pipeline_mode<synchronous>, transform_indices = @transform_3, window_bounds = array<i64: 2, 128, 128>}, {pipeline_mode = #tpu.pipeline_mode<synchronous>, transform_indices = @transform_4, window_bounds = array<i64: 2, 1, 128>}, {pipeline_mode = #tpu.pipeline_mode<synchronous>, transform_indices = @transform_5, window_bounds = array<i64: 128, 128>}, {pipeline_mode = #tpu.pipeline_mode<synchronous>, transform_indices = @transform_6, window_bounds = array<i64: 1, 128>}, {transform_indices = @transform_7, window_bounds = array<i64: 16, 128>}]} {
    %c0 = arith.constant 0 : index
    %c0_0 = arith.constant 0 : index
    %0 = vector.load %arg1[%c0, %c0_0] : memref<16x128xf32, #tpu.memory_space<vmem>>, vector<16x128xf32>
    %c0_1 = arith.constant 0 : index
    %c0_2 = arith.constant 0 : index
    %1 = vector.load %arg2[%c0_1, %c0_2] : memref<128x128xf32, #tpu.memory_space<vmem>>, vector<128x128xf32>
    %cst = arith.constant dense<0.000000e+00> : vector<16x128xf32>
    %2 = tpu.matmul %0, %1, %cst {dimension_numbers = #tpu.dot_dimension_numbers<[1], [0], [0], [1], [0, 0, 1, 1], [], []>} : vector<16x128xf32>, vector<128x128xf32>, vector<16x128xf32> -> vector<16x128xf32>
    %c0_3 = arith.constant 0 : index
    %c0_4 = arith.constant 0 : index
    %3 = vector.load %arg3[%c0_3, %c0_4] : memref<1x128xf32, #tpu.memory_space<vmem>>, vector<1x128xf32>
    %4 = vector.broadcast %3 : vector<1x128xf32> to vector<16x128xf32>
    %5 = arith.addf %2, %4 : vector<16x128xf32>
    %6 = math.tanh %5 : vector<16x128xf32>
    %c0_i32 = arith.constant 0 : i32
    %7 = arith.index_cast %c0_i32 : i32 to index
    %c0_5 = arith.constant 0 : index
    %c0_6 = arith.constant 0 : index
    %8 = vector.load %arg4[%7, %c0_5, %c0_6] : memref<2x128x128xf32, #tpu.memory_space<vmem>>, vector<1x128x128xf32>
    %9 = vector.shape_cast %8 : vector<1x128x128xf32> to vector<128x128xf32>
    %cst_7 = arith.constant dense<0.000000e+00> : vector<16x128xf32>
    %10 = tpu.matmul %6, %9, %cst_7 {dimension_numbers = #tpu.dot_dimension_numbers<[1], [0], [0], [1], [0, 0, 1, 1], [], []>} : vector<16x128xf32>, vector<128x128xf32>, vector<16x128xf32> -> vector<16x128xf32>
    %11 = arith.index_cast %c0_i32 : i32 to index
    %c0_8 = arith.constant 0 : index
    %c0_9 = arith.constant 0 : index
    %12 = vector.load %arg5[%11, %c0_8, %c0_9] : memref<2x1x128xf32, #tpu.memory_space<vmem>>, vector<1x1x128xf32>
    %13 = vector.shape_cast %12 : vector<1x1x128xf32> to vector<1x128xf32>
    %14 = vector.broadcast %13 : vector<1x128xf32> to vector<16x128xf32>
    %15 = arith.addf %10, %14 : vector<16x128xf32>
    %16 = math.tanh %15 : vector<16x128xf32>
    %c1_i32 = arith.constant 1 : i32
    %17 = arith.index_cast %c1_i32 : i32 to index
    %c0_10 = arith.constant 0 : index
    %c0_11 = arith.constant 0 : index
    %18 = vector.load %arg4[%17, %c0_10, %c0_11] : memref<2x128x128xf32, #tpu.memory_space<vmem>>, vector<1x128x128xf32>
    %19 = vector.shape_cast %18 : vector<1x128x128xf32> to vector<128x128xf32>
    %cst_12 = arith.constant dense<0.000000e+00> : vector<16x128xf32>
    %20 = tpu.matmul %16, %19, %cst_12 {dimension_numbers = #tpu.dot_dimension_numbers<[1], [0], [0], [1], [0, 0, 1, 1], [], []>} : vector<16x128xf32>, vector<128x128xf32>, vector<16x128xf32> -> vector<16x128xf32>
    %21 = arith.index_cast %c1_i32 : i32 to index
    %c0_13 = arith.constant 0 : index
    %c0_14 = arith.constant 0 : index
    %22 = vector.load %arg5[%21, %c0_13, %c0_14] : memref<2x1x128xf32, #tpu.memory_space<vmem>>, vector<1x1x128xf32>
    %23 = vector.shape_cast %22 : vector<1x1x128xf32> to vector<1x128xf32>
    %24 = vector.broadcast %23 : vector<1x128xf32> to vector<16x128xf32>
    %25 = arith.addf %20, %24 : vector<16x128xf32>
    %26 = math.tanh %25 : vector<16x128xf32>
    %c2_i32 = arith.constant 2 : i32
    %c0_15 = arith.constant 0 : index
    %c0_16 = arith.constant 0 : index
    %27 = vector.load %arg6[%c0_15, %c0_16] : memref<128x128xf32, #tpu.memory_space<vmem>>, vector<128x128xf32>
    %cst_17 = arith.constant dense<0.000000e+00> : vector<16x128xf32>
    %28 = tpu.matmul %26, %27, %cst_17 {dimension_numbers = #tpu.dot_dimension_numbers<[1], [0], [0], [1], [0, 0, 1, 1], [], []>} : vector<16x128xf32>, vector<128x128xf32>, vector<16x128xf32> -> vector<16x128xf32>
    %c0_18 = arith.constant 0 : index
    %c0_19 = arith.constant 0 : index
    %29 = vector.load %arg7[%c0_18, %c0_19] : memref<1x128xf32, #tpu.memory_space<vmem>>, vector<1x128xf32>
    %30 = vector.broadcast %29 : vector<1x128xf32> to vector<16x128xf32>
    %31 = arith.addf %28, %30 : vector<16x128xf32>
    %c0_20 = arith.constant 0 : index
    %c0_21 = arith.constant 0 : index
    %32 = vector.load %arg8[%c0_20, %c0_21] : memref<16x128xf32, #tpu.memory_space<vmem>>, vector<16x128xf32>
    tpu.vector_store %arg8[%c0_20, %c0_21], %31 {strides = array<i32>} : memref<16x128xf32, #tpu.memory_space<vmem>>, vector<16x128xf32>,
    return
  }
  func.func @transform_0(%arg0: i32) -> (i32, i32) {
    %c0_i32 = arith.constant 0 : i32
    %c0_i32_0 = arith.constant 0 : i32
    return %arg0, %c0_i32 : i32, i32
  }
  func.func @transform_1(%arg0: i32) -> (i32, i32) {
    %c0_i32 = arith.constant 0 : i32
    %c0_i32_0 = arith.constant 0 : i32
    %c0_i32_1 = arith.constant 0 : i32
    return %c0_i32, %c0_i32_0 : i32, i32
  }
  func.func @transform_2(%arg0: i32) -> (i32, i32) {
    %c0_i32 = arith.constant 0 : i32
    %c0_i32_0 = arith.constant 0 : i32
    %c0_i32_1 = arith.constant 0 : i32
    return %c0_i32, %c0_i32_0 : i32, i32
  }
  func.func @transform_3(%arg0: i32) -> (i32, i32, i32) {
    %c0_i32 = arith.constant 0 : i32
    %c0_i32_0 = arith.constant 0 : i32
    %c0_i32_1 = arith.constant 0 : i32
    %c0_i32_2 = arith.constant 0 : i32
    return %c0_i32, %c0_i32_0, %c0_i32_1 : i32, i32, i32
  }
  func.func @transform_4(%arg0: i32) -> (i32, i32, i32) {
    %c0_i32 = arith.constant 0 : i32
    %c0_i32_0 = arith.constant 0 : i32
    %c0_i32_1 = arith.constant 0 : i32
    %c0_i32_2 = arith.constant 0 : i32
    return %c0_i32, %c0_i32_0, %c0_i32_1 : i32, i32, i32
  }
  func.func @transform_5(%arg0: i32) -> (i32, i32) {
    %c0_i32 = arith.constant 0 : i32
    %c0_i32_0 = arith.constant 0 : i32
    %c0_i32_1 = arith.constant 0 : i32
    return %c0_i32, %c0_i32_0 : i32, i32
  }
  func.func @transform_6(%arg0: i32) -> (i32, i32) {
    %c0_i32 = arith.constant 0 : i32
    %c0_i32_0 = arith.constant 0 : i32
    %c0_i32_1 = arith.constant 0 : i32
    return %c0_i32, %c0_i32_0 : i32, i32
  }
  func.func @transform_7(%arg0: i32) -> (i32, i32) {
    %c0_i32 = arith.constant 0 : i32
    %c0_i32_0 = arith.constant 0 : i32
    return %arg0, %c0_i32 : i32, i32
  }
}

</mosaic_0001>

<bundles_post_ra>
// kernel: tpu_custom_call.1
= control target key start
LH: loop header
LB: loop body
LE: loop exit
PB: predicated region body
PF: predicated region fallthrough
CT: control target
= control target key end

     0   :  { %s1656_s0 = inlined_call_operand.hbm [shape: f32[32,128], index: 0, kind: input, shape index: {}]   ;;  %s1657_s1 = inlined_call_operand.hbm [shape: f32[128,128], index: 1, kind: input, shape index: {}]   ;;  %s1658_s2 = inlined_call_operand.vmem [shape: f32[1,128], index: 2, kind: input, shape index: {}]   ;;  %s1659_s3 = inlined_call_operand.hbm [shape: f32[2,128,128], index: 3, kind: input, shape index: {}]   ;;  %s1660_s4 = inlined_call_operand.vmem [shape: f32[2,1,128], index: 4, kind: input, shape index: {}]   ;;  %s1661_s5 = inlined_call_operand.hbm [shape: f32[128,128], index: 5, kind: input, shape index: {}]   ;;  %s1662_s6 = inlined_call_operand.vmem [shape: f32[1,128], index: 6, kind: input, shape index: {}]   ;;  %s1663_s7 = inlined_call_operand.hbm [shape: f32[32,128], index: 7, kind: output, shape index: {}]  }
   0x1   :  { %1670 = sst [smem:[#allocation15_spill]] %s1657_s1 }
   0x2   :  { %12 = vsyncpa [#allocation3], 0 }
   0x3   :  { %14 = vsyncpa [#allocation3 + $0x1], 0 }
   0x4   :  { %15 = vsyncpa [#allocation6], 0 }
   0x5   :  { %16 = vsyncpa [#allocation9], 0 }
   0x6   :  { %17 = vsyncpa [#allocation4], 0 }
   0x7   :  { %19 = vsyncpa [#allocation4 + $0x1], 0  ;;  %s1424_s24 = smov 0   ;;  %s1426_s25 = smov 0  }
   0x8   :  { %s1428_s26 = smov 0   ;;  %s1430_s27 = smov 0  }
   0x9 LB: > { %s1445_s28 = sadd.s32 4294967295, %s1373_s27   ;;  %s863_s29 = sadd.s32 4294967294, %s1373_s27   ;;  %s1373_s27 = sphi %s1430_s27, %s1692_s27   ;;  %s1369_s26 = sphi %s1428_s26, %s1691_s26   ;;  %s1365_s25 = sphi %s1426_s25, %s1690_s25   ;;  %s1361_s24 = sphi %s1424_s24, %s1689_s24  }
   0xa   : > { %p45_p0 = scmp.ne.s32.totalorder %s1365_s25, %s1361_s24  ;;  %p1664_p1 = scmp.eq.s32.totalorder %s1445_s28, 0 }
   0xb   : > { %p195_p2 = scmp.eq.s32.totalorder %s1445_s28, 1  ;;  %p201_p3 = scmp.eq.s32.totalorder %s863_s29, 1 }
   0xc   : > { %p1454_p4 = por %p1664_p1, %p45_p0  ;;  %p864_p5 = scmp.ge.s32.totalorder %s1373_s27, 1 }
   0xd   : > { %p1459_p6 = por %p201_p3, %p45_p0  ;;  %p208_p7 = scmp.lt.s32.totalorder %s1373_s27, 3 }
   0xe   : > { %s1671_s30 = scalar_select %p1454_p4, 1, 0 }
   0xf   : > { %s1672_s8 = scalar_select %p1459_p6, 1, 0 }
  0x10   : > { %p1464_p8 = pnand %p864_p5, %p208_p7  ;;  %s1375_s10 = smov [#allocation5]  }
  0x11   : > { %s220_s11 = sshll.u32 %s1375_s10, 4  ;;  %s1376_s13 = smov [#allocation7]   ;;  %s221_s11 = int_to_ptr.vmem [resolvable:$true] %s220_s11 }
  0x12   : > { %s1673_s9 = scalar_select %p1464_p8, 1, 0 }
  0x13   : > { %p1118_p9 = pneg %p1464_p8  ;;  %s236_s14 = sshll.u32 %s1376_s13, 4  ;;  %s237_s14 = int_to_ptr.vmem [resolvable:$true] %s236_s14 }
  0x14   : > { %s1377_s15 = smov [#allocation8]   ;;  %s1206_s17 = scalar_lea.vmem %s221_s11, 2048 }
  0x15   : > { %p1473_p11 = pnand %p1118_p9, %p1664_p1  ;;  %s252_s16 = sshll.u32 %s1377_s15, 4  ;;  %s253_s16 = int_to_ptr.vmem [resolvable:$true] %s252_s16 }
  0x16   : > { %p1207_p13 = scmp.ne.s32.totalorder %s221_s11, %s1206_s17  ;;  %p1214_p5 = scmp.lt.s32.totalorder %s221_s11, %s221_s11 }
  0x17   : > { %p1197_p12 = pneg %p1473_p11  ;;  %p1215_p7 = scmp.lt.s32.totalorder %s1206_s17, %s1206_s17 }
  0x19   : > { %p1209_p0 = pnand %p1207_p13, %p1197_p12  ;;  %p1216_p9 = por %p1215_p7, %p1214_p5 }
  0x1b   : > { %p1210_p3 = pneg %p1209_p0 }
  0x1d   : > { %p1217_p10 = pnand %p1216_p9, %p1210_p3 }
  0x1f   : > { %1220 = shalt.err (!%p1217_p10)
}
  0x20   : > { %s1665_s18 = smov 128   ;;  %s1666_s19 = smov 8  }
  0x21   : > { %s1675_s1 = sld [smem:[#allocation15_spill]]  ;;  %s1232_s22 = scalar_lea.vmem %s237_s14, 4096 }
  0x22   : > { %p1233_p13 = scmp.ne.s32.totalorder %s237_s14, %s1232_s22  ;;  %p1240_p3 = scmp.lt.s32.totalorder %s237_s14, %s237_s14 }
  0x23   : > { %p1241_p10 = scmp.lt.s32.totalorder %s1232_s22, %s1232_s22 }
  0x24   : > { %p1235_p0 = pnand %p1233_p13, %p1197_p12 }
  0x25   : > { %p1242_p7 = por %p1241_p10, %p1240_p3 }
  0x26   : > { %p1236_p5 = pneg %p1235_p0 }
  0x27   : > { %1121 = dma.hbm_to_vmem [thread:$0]  (!%p1473_p11), %s1675_s1, 2048, %s221_s11, [#allocation6], %s1665_s18, %s1665_s18, %s1666_s19  }
  0x28   : > { %p1243_p9 = pnand %p1242_p7, %p1236_p5 }
  0x2a   : > { %1246 = shalt.err (!%p1243_p9)
}
  0x2b   : > { %1124 = dma.hbm_to_vmem [thread:$0]  (!%p1473_p11), %s1659_s3, 4096, %s237_s14, [#allocation6], %s1665_s18, %s1665_s18, %s1666_s19  }
  0x2c   : > { %s1258_s10 = scalar_lea.vmem %s253_s16, 2048  ;;  %p1266_p3 = scmp.lt.s32.totalorder %s253_s16, %s253_s16 }
  0x2d   : > { %p1259_p1 = scmp.ne.s32.totalorder %s253_s16, %s1258_s10  ;;  %p1267_p5 = scmp.lt.s32.totalorder %s1258_s10, %s1258_s10 }
  0x2f   : > { %p1261_p13 = pnand %p1259_p1, %p1197_p12  ;;  %p1268_p10 = por %p1267_p5, %p1266_p3 }
  0x31   : > { %p1262_p0 = pneg %p1261_p13 }
  0x33   : > { %p1269_p7 = pnand %p1268_p10, %p1262_p0 }
  0x35   : > { %1272 = shalt.err (!%p1269_p7)
}
  0x36   : > { %1127 = dma.hbm_to_vmem [thread:$0]  (!%p1473_p11), %s1661_s5, 2048, %s253_s16, [#allocation9], %s1665_s18, %s1665_s18, %s1666_s19  }
  0x37   : > { %s1513_s14 = sadd.s32 1, %s1373_s27   ;;  %s32_s15 = sadd.s32 1, %s1369_s26 }
  0x38   : > { %s29_s12 = ssub.s32 %s1373_s27, %s1513_s14  ;;  %p39_p12 = scmp.ne.s32.totalorder %s1369_s26, %s1365_s25 }
  0x39   : > { %p30_p1 = scmp.eq.s32.totalorder %s29_s12, 0  ;;  %p40_p9 = scmp.eq.s32.totalorder %s1373_s27, 0 }
  0x3a   : > { %p1139_p13 = scmp.lt.s32.totalorder %s1373_s27, 2  ;;  %p1527_p3 = por %p195_p2, %p39_p12 }
  0x3b   : > { %s1523_s17 = scalar_select %p30_p1, %s1369_s26, %s32_s15  }
  0x3c   : > { %p41_p0 = por %p40_p9, %p39_p12  ;;  %s269_s21 = sand.u32 1, %s1369_s26  }
  0x3d   : > { %s1676_s20 = scalar_select %p1527_p3, 1, 0 }
  0x3e   : > { %s888_s22 = sshll.u32 %s1373_s27, 8  ;;  %s869_s16 = sshll.u32 %s269_s21, 4 }
  0x3f   : > { %s1536_s10 = scalar_lea.hbm %s1656_s0, %s888_s22  ;;  %s273_s11 = scalar_lea.vmem [#allocation2], %s869_s16 }
  0x40   : > { %s280_s13 = sshll.u32 %s273_s11, 4  ;;  %p1538_p11 = pnand %p1139_p13, %p41_p0  ;;  %s1542_s13 = int_to_ptr.vmem [resolvable:$true] %s280_s13 }
  0x41   : > { %s1544_s15 = scalar_lea.sflag [#allocation3], %s269_s21  ;;  %s1273_s18 = scalar_lea.hbm %s1536_s10, 256 }
  0x42   : > { %p1274_p2 = scmp.ne.s32.totalorder %s1536_s10, %s1273_s18  ;;  %p1275_p5 = pneg %p1538_p11 }
  0x43   : > { %s1278_s16 = scalar_lea.hbm %s1656_s0, 512  ;;  %p1279_p1 = scmp.lt.s32.totalorder %s1536_s10, %s1656_s0 }
  0x44   : > { %p1276_p10 = pnand %p1275_p5, %p1274_p2  ;;  %p1280_p12 = scmp.lt.s32.totalorder %s1278_s16, %s1273_s18 }
  0x46   : > { %p1277_p7 = pneg %p1276_p10  ;;  %p1281_p9 = por %p1280_p12, %p1279_p1 }
  0x48   : > { %p1282_p13 = pnand %p1281_p9, %p1277_p7 }
  0x4a   : > { %1285 = shalt.err (!%p1282_p13)
}
  0x4b   : > { %s1286_s21 = scalar_lea.vmem %s1542_s13, 256  ;;  %s1380_s19 = smov [#allocation2]  }
  0x4c   : > { %p1287_p0 = scmp.ne.s32.totalorder %s1542_s13, %s1286_s21  ;;  %s1291_s1 = sshll.u32 %s1380_s19, 4  ;;  %s1292_s1 = int_to_ptr.vmem [resolvable:$false] %s1291_s1 }
  0x4d   : > { %s1293_s22 = scalar_lea.vmem %s1292_s1, 512  ;;  %p1294_p10 = scmp.lt.s32.totalorder %s1542_s13, %s1292_s1 }
  0x4e   : > { %p1289_p6 = pnand %p1287_p0, %p1275_p5  ;;  %p1295_p3 = scmp.lt.s32.totalorder %s1293_s22, %s1286_s21 }
  0x50   : > { %p1290_p2 = pneg %p1289_p6  ;;  %p1296_p4 = por %p1295_p3, %p1294_p10 }
  0x52   : > { %p1297_p8 = pnand %p1296_p4, %p1290_p2 }
  0x54   : > { %1300 = shalt.err (!%p1297_p8)
}
  0x55   : > { %s1678_s18 = smov 8   ;;  %s1679_s23 = smov 128  }
  0x56   : > { %1131 = dma.hbm_to_vmem [thread:$0]  (!%p1538_p11), %s1536_s10, 256, %s1542_s13, %s1544_s15, %s1679_s23, %s1679_s23, %s1678_s18  }
  0x57   : > { %p1680_p6 = scmp.ne.s32.totalorder %s1673_s9, 0 }
  0x58   : > { %s1571_s19 = sand.u32 (!%p1680_p6), 1, %s1365_s25   ;;  %p1681_p4 = scmp.ne.s32.totalorder (!%p1680_p6), %s1671_s30, 0 }
  0x59   : > { %292 = sbr.rel (%p1680_p6) target bundleno = 982 (0x3d6), region = 48  ;;  %s873_s1 = sshll.u32 (!%p1680_p6), %s1571_s19, 4 }
  0x5a   : > { %s295_s16 = scalar_lea.sflag (!%p1680_p6), [#allocation3], %s1571_s19  ;;  %s1577_s12 = scalar_lea.vmem (!%p1680_p6), [#allocation2], %s873_s1 }
  0x5e   : > { %1344 = dma.done.wait (%p1681_p4), %s295_s16, 256  }
  0x5f   : > { %1346 = vsyncadd (%p1681_p4), %s295_s16, 4294967040  ;;  %p1682_p8 = scmp.eq.s32.totalorder %s1445_s28, 0 }
  0x61   : > { %1348 = dma.done.wait (%p1682_p8), [#allocation6], 6144   ;;  %p1683_p3 = pmov %p1682_p8 }
  0x63   : > { %1350 = vsyncadd (%p1683_p3), [#allocation6], 4294961152  ;;  %p1684_p11 = pmov %p1683_p3 }
  0x64   : > { %p1685_p5 = pmov %p1683_p3 }
  0x65   : > { %1352 = dma.done.wait (%p1684_p11), [#allocation9], 2048  }
  0x66   : > { %1354 = vsyncadd (%p1685_p5), [#allocation9], 4294965248  ;;  %v360_v0 = vld [vmem:[#allocation5 + $0x78] sm:$0xff]  ;;  %v359_v1 = vld [vmem:[#allocation5 + $0x70] sm:$0xff]  ;;  %s340_s22 = scalar_lea.vmem [#allocation10], %s873_s1  ;;  %s889_s23 = sshll.u32 %s1445_s28, 8 }
  0x67   : > { %962 = vmatprep.subr.mxu0 %v360_v0  ;;  %v358_v2 = vld [vmem:[#allocation5 + $0x68] sm:$0xff]  ;;  %v357_v3 = vld [vmem:[#allocation5 + $0x60] sm:$0xff]  ;;  %v356_v5 = vld [vmem:[#allocation5 + $0x58] sm:$0xff]  ;;  %s761_s18 = sshll.u32 %s340_s22, 4  ;;  %s1613_s30 = scalar_lea.hbm %s1663_s7, %s889_s23  ;;  %s1608_s18 = int_to_ptr.vmem [resolvable:$true] %s761_s18 }
  0x68   : > { %963 = vmatpush3.msra.mxu0 %v360_v0  ;;  %v343_v4 = vld [vmem:[%s1577_s12] sm:$0xff]  ;;  %v460_v6 = vld [vmem:[#allocation7 + $0x78] sm:$0xff]  ;;  %v458_v9 = vld [vmem:[#allocation7 + $0x68] sm:$0xff]  ;;  %s748_s9 = scalar_lea.sflag [#allocation4], %s1571_s19  ;;  %s1301_s1 = scalar_lea.vmem %s1608_s18, 256 }
  0x69   : > { %964 = vmatprep.subr.mxu0 %v359_v1  ;;  %994 = vmatprep.mubr.f32.mxu0 %v343_v4  ;;  %v459_v7 = vld [vmem:[#allocation7 + $0x70] sm:$0xff]  ;;  %v354_v10 = vld [vmem:[#allocation5 + $0x48] sm:$0xff]  ;;  %v457_v11 = vld [vmem:[#allocation7 + $0x60] sm:$0xff]  ;;  %p1302_p7 = scmp.ne.s32.totalorder %s1608_s18, %s1301_s1  ;;  %p1686_p1 = scmp.ne.s32.totalorder %s1676_s20, 0 }
  0x6a   : > { %965 = vmatpush3.msra.mxu0 %v359_v1  ;;  %997 = vmatprep.subr.mxu1 %v460_v6  ;;  %v355_v8 = vld [vmem:[#allocation5 + $0x50] sm:$0xff]  ;;  %v353_v12 = vld [vmem:[#allocation5 + $0x40] sm:$0xff]  ;;  %v456_v13 = vld [vmem:[#allocation7 + $0x58] sm:$0xff]  ;;  %s1381_s28 = smov [#allocation10]  }
  0x6b   : > { %966 = vmatprep.subr.mxu0 %v358_v2  ;;  %998 = vmatpush3.msra.mxu1 %v460_v6  ;;  %v352_v14 = vld [vmem:[#allocation5 + $0x38] sm:$0xff]  ;;  %v455_v15 = vld [vmem:[#allocation7 + $0x50] sm:$0xff]  ;;  %v350_v17 = vld [vmem:[#allocation5 + $0x28] sm:$0xff]  ;;  %p1303_p12 = pnand %p1302_p7, %p1686_p1  ;;  %s1305_s10 = sshll.u32 %s1381_s28, 4  ;;  %s1306_s10 = int_to_ptr.vmem [resolvable:$false] %s1305_s10 }
  0x6c   : > { %967 = vmatpush3.msra.mxu0 %v358_v2  ;;  %999 = vmatprep.subr.mxu1 %v459_v7  ;;  %v351_v16 = vld [vmem:[#allocation5 + $0x30] sm:$0xff]  ;;  %v349_v18 = vld [vmem:[#allocation5 + $0x20] sm:$0xff]  ;;  %v348_v19 = vld [vmem:[#allocation5 + $0x18] sm:$0xff]  ;;  %s1307_s13 = scalar_lea.vmem %s1306_s10, 512  ;;  %p1308_p13 = scmp.lt.s32.totalorder %s1608_s18, %s1306_s10 }
  0x6d   : > { %968 = vmatprep.subr.mxu0 %v357_v3  ;;  %1000 = vmatpush3.msra.mxu1 %v459_v7  ;;  %v347_v20 = vld [vmem:[#allocation5 + $0x10] sm:$0xff]  ;;  %v346_v21 = vld [vmem:[#allocation5 + $0x8] sm:$0xff]  ;;  %v345_v22 = vld [vmem:[#allocation5] sm:$0xff]  ;;  %p1304_p9 = pneg %p1303_p12  ;;  %p1309_p0 = scmp.lt.s32.totalorder %s1307_s13, %s1301_s1 }
  0x6e   : > { %969 = vmatpush3.msra.mxu0 %v357_v3  ;;  %1001 = vmatprep.subr.mxu1 %v458_v9  ;;  %v344_v23 = vld [vmem:[%s1577_s12 + $0x8] sm:$0xff]  ;;  %v453_v25 = vld [vmem:[#allocation7 + $0x40] sm:$0xff]  ;;  %v451_v27 = vld [vmem:[#allocation7 + $0x30] sm:$0xff] }
  0x6f   : > { %970 = vmatprep.subr.mxu0 %v356_v5  ;;  %1002 = vmatpush3.msra.mxu1 %v458_v9  ;;  %v454_v24 = vld [vmem:[#allocation7 + $0x48] sm:$0xff]  ;;  %v452_v26 = vld [vmem:[#allocation7 + $0x38] sm:$0xff]  ;;  %v449_v29 = vld [vmem:[#allocation7 + $0x20] sm:$0xff]  ;;  %p1310_p2 = por %p1309_p0, %p1308_p13 }
  0x70   : > { %971 = vmatpush3.msra.mxu0 %v356_v5  ;;  %1003 = vmatprep.subr.mxu1 %v457_v11  ;;  %v450_v28 = vld [vmem:[#allocation7 + $0x28] sm:$0xff]  ;;  %v448_v30 = vld [vmem:[#allocation7 + $0x18] sm:$0xff]  ;;  %v447_v31 = vld [vmem:[#allocation7 + $0x10] sm:$0xff] }
  0x71   : > { %972 = vmatprep.subr.mxu0 %v355_v8  ;;  %1004 = vmatpush3.msra.mxu1 %v457_v11  ;;  %v446_v32 = vld [vmem:[#allocation7 + $0x8] sm:$0xff]  ;;  %v445_v33 = vld [vmem:[#allocation7] sm:$0xff]  ;;  %v561_v34 = vld [vmem:[#allocation7 + $0xf8] sm:$0xff]  ;;  %p1311_p10 = pnand %p1310_p2, %p1304_p9 }
  0x72   : > { %973 = vmatpush3.msra.mxu0 %v355_v8  ;;  %1005 = vmatprep.subr.mxu1 %v456_v13  ;;  %v560_v35 = vld [vmem:[#allocation7 + $0xf0] sm:$0xff]  ;;  %v559_v36 = vld [vmem:[#allocation7 + $0xe8] sm:$0xff]  ;;  %v558_v37 = vld [vmem:[#allocation7 + $0xe0] sm:$0xff] }
  0x73   : > { %974 = vmatprep.subr.mxu0 %v354_v10  ;;  %1006 = vmatpush3.msra.mxu1 %v456_v13  ;;  %v557_v38 = vld [vmem:[#allocation7 + $0xd8] sm:$0xff]  ;;  %v556_v39 = vld [vmem:[#allocation7 + $0xd0] sm:$0xff]  ;;  %v878_v40 = vld [vmem:[%s1658_s2] ss:$0 sm:$0xff] }
  0x74   : > { %975 = vmatpush3.msra.mxu0 %v354_v10  ;;  %1007 = vmatprep.subr.mxu1 %v455_v15  ;;  %v555_v47 = vld [vmem:[#allocation7 + $0xc8] sm:$0xff]  ;;  %v554_v48 = vld [vmem:[#allocation7 + $0xc0] sm:$0xff]  ;;  %v553_v49 = vld [vmem:[#allocation7 + $0xb8] sm:$0xff] }
  0x75   : > { %976 = vmatprep.subr.mxu0 %v353_v12  ;;  %1008 = vmatpush3.msra.mxu1 %v455_v15  ;;  %v552_v50 = vld [vmem:[#allocation7 + $0xb0] sm:$0xff]  ;;  %v551_v51 = vld [vmem:[#allocation7 + $0xa8] sm:$0xff]  ;;  %v550_v52 = vld [vmem:[#allocation7 + $0xa0] sm:$0xff] }
  0x76   : > { %977 = vmatpush3.msra.mxu0 %v353_v12  ;;  %1009 = vmatprep.subr.mxu1 %v454_v24  ;;  %v549_v53 = vld [vmem:[#allocation7 + $0x98] sm:$0xff]  ;;  %v548_v54 = vld [vmem:[#allocation7 + $0x90] sm:$0xff]  ;;  %v547_v55 = vld [vmem:[#allocation7 + $0x88] sm:$0xff] }
  0x77   : > { %978 = vmatprep.subr.mxu0 %v352_v14  ;;  %1010 = vmatpush3.msra.mxu1 %v454_v24  ;;  %v546_v56 = vld [vmem:[#allocation7 + $0x80] sm:$0xff]  ;;  %v662_v57 = vld [vmem:[#allocation8 + $0x78] sm:$0xff]  ;;  %v661_v58 = vld [vmem:[#allocation8 + $0x70] sm:$0xff] }
  0x78   : > { %979 = vmatpush3.msra.mxu0 %v352_v14  ;;  %1011 = vmatprep.subr.mxu1 %v453_v25  ;;  %v660_v59 = vld [vmem:[#allocation8 + $0x68] sm:$0xff]  ;;  %v659_v60 = vld [vmem:[#allocation8 + $0x60] sm:$0xff]  ;;  %v658_v61 = vld [vmem:[#allocation8 + $0x58] sm:$0xff] }
  0x79   : > { %980 = vmatprep.subr.mxu0 %v351_v16  ;;  %1012 = vmatpush3.msra.mxu1 %v453_v25  ;;  %v657_v62 = vld [vmem:[#allocation8 + $0x50] sm:$0xff]  ;;  %v879_v63 = vld [vmem:[%s1660_s4] ss:$0 sm:$0xff]  ;;  %v656_v6 = vld [vmem:[#allocation8 + $0x48] sm:$0xff] }
  0x7a   : > { %981 = vmatpush3.msra.mxu0 %v351_v16  ;;  %1013 = vmatprep.subr.mxu1 %v452_v26  ;;  %v655_v7 = vld [vmem:[#allocation8 + $0x40] sm:$0xff]  ;;  %v654_v8 = vld [vmem:[#allocation8 + $0x38] sm:$0xff]  ;;  %v653_v9 = vld [vmem:[#allocation8 + $0x30] sm:$0xff] }
  0x7b   : > { %982 = vmatprep.subr.mxu0 %v350_v17  ;;  %1014 = vmatpush3.msra.mxu1 %v452_v26  ;;  %v652_v10 = vld [vmem:[#allocation8 + $0x28] sm:$0xff]  ;;  %v651_v11 = vld [vmem:[#allocation8 + $0x20] sm:$0xff]  ;;  %v650_v12 = vld [vmem:[#allocation8 + $0x18] sm:$0xff] }
  0x7c   : > { %983 = vmatpush3.msra.mxu0 %v350_v17  ;;  %1015 = vmatprep.subr.mxu1 %v451_v27  ;;  %v649_v13 = vld [vmem:[#allocation8 + $0x10] sm:$0xff]  ;;  %v648_v14 = vld [vmem:[#allocation8 + $0x8] sm:$0xff]  ;;  %v647_v15 = vld [vmem:[#allocation8] sm:$0xff] }
  0x7d   : > { %984 = vmatprep.subr.mxu0 %v349_v18  ;;  %1016 = vmatpush3.msra.mxu1 %v451_v27  ;;  %v881_v16 = vld [vmem:[%s1660_s4 + $0x1] ss:$0 sm:$0xff] }
  0x7e   : > { %985 = vmatpush3.msra.mxu0 %v349_v18  ;;  %1017 = vmatprep.subr.mxu1 %v450_v28 }
  0x7f   : > { %986 = vmatprep.subr.mxu0 %v348_v19  ;;  %1018 = vmatpush3.msra.mxu1 %v450_v28 }
  0x80   : > { %987 = vmatpush3.msra.mxu0 %v348_v19  ;;  %1019 = vmatprep.subr.mxu1 %v449_v29 }
  0x81   : > { %988 = vmatprep.subr.mxu0 %v347_v20  ;;  %1020 = vmatpush3.msra.mxu1 %v449_v29 }
  0x82   : > { %989 = vmatpush3.msra.mxu0 %v347_v20  ;;  %1021 = vmatprep.subr.mxu1 %v448_v30 }
  0x83   : > { %990 = vmatprep.subr.mxu0 %v346_v21  ;;  %1022 = vmatpush3.msra.mxu1 %v448_v30 }
  0x84   : > { %991 = vmatpush3.msra.mxu0 %v346_v21  ;;  %1023 = vmatprep.subr.mxu1 %v447_v31 }
  0x85   : > { %992 = vmatprep.subr.mxu0 %v345_v22  ;;  %1024 = vmatpush3.msra.mxu1 %v447_v31 }
  0x86   : > { %993 = vmatpush3.msra.mxu0 %v345_v22  ;;  %1025 = vmatprep.subr.mxu1 %v446_v32 }
  0x87   : > { %995 = vmatmul.mubr.f32.vlgmr.msra.gmra.mxu0 %v344_v23  ;;  %1026 = vmatpush3.msra.mxu1 %v446_v32  ;;  %v882_v23 = vld [vmem:[%s1662_s6] ss:$0 sm:$0xff] }
  0x88   : > { %1027 = vmatprep.subr.mxu1 %v445_v33  ;;  %1032 = vmatprep.subr.mxu0 %v561_v34 }
  0x89   : > { %1028 = vmatpush3.msra.mxu1 %v445_v33  ;;  %1033 = vmatpush3.msra.mxu0 %v561_v34 }
  0x8a   : > { %1034 = vmatprep.subr.mxu0 %v560_v35  ;;  %1067 = vmatprep.subr.mxu1 %v662_v57 }
  0x8b   : > { %1035 = vmatpush3.msra.mxu0 %v560_v35 }
  0x8c   : > { %1036 = vmatprep.subr.mxu0 %v559_v36 }
  0x8d   : > { %1037 = vmatpush3.msra.mxu0 %v559_v36 }
  0x8e   : > { %1038 = vmatprep.subr.mxu0 %v558_v37 }
  0x8f   : > { %1039 = vmatpush3.msra.mxu0 %v558_v37 }
  0x90   : > { %1040 = vmatprep.subr.mxu0 %v557_v38 }
  0x91   : > { %1041 = vmatpush3.msra.mxu0 %v557_v38 }
  0x92   : > { %1042 = vmatprep.subr.mxu0 %v556_v39 }
  0x93   : > { %1043 = vmatpush3.msra.mxu0 %v556_v39 }
  0x94   : > { %1044 = vmatprep.subr.mxu0 %v555_v47 }
  0x95   : > { %1045 = vmatpush3.msra.mxu0 %v555_v47 }
  0x96   : > { %1046 = vmatprep.subr.mxu0 %v554_v48 }
  0x97   : > { %1047 = vmatpush3.msra.mxu0 %v554_v48 }
  0x98   : > { %1048 = vmatprep.subr.mxu0 %v553_v49 }
  0x99   : > { %1049 = vmatpush3.msra.mxu0 %v553_v49 }
  0x9a   : > { %1050 = vmatprep.subr.mxu0 %v552_v50 }
  0x9b   : > { %1051 = vmatpush3.msra.mxu0 %v552_v50 }
  0x9c   : > { %1052 = vmatprep.subr.mxu0 %v551_v51 }
  0x9d   : > { %1053 = vmatpush3.msra.mxu0 %v551_v51 }
  0x9e   : > { %1054 = vmatprep.subr.mxu0 %v550_v52 }
  0x9f   : > { %1055 = vmatpush3.msra.mxu0 %v550_v52 }
  0xa0   : > { %1056 = vmatprep.subr.mxu0 %v549_v53 }
  0xa1   : > { %1057 = vmatpush3.msra.mxu0 %v549_v53 }
  0xa2   : > { %1058 = vmatprep.subr.mxu0 %v548_v54 }
  0xa3   : > { %1059 = vmatpush3.msra.mxu0 %v548_v54 }
  0xa4   : > { %1060 = vmatprep.subr.mxu0 %v547_v55 }
  0xa5   : > { %1061 = vmatpush3.msra.mxu0 %v547_v55 }
  0xa6   : > { %1062 = vmatprep.subr.mxu0 %v546_v56 }
  0xa7   : > { %1063 = vmatpush3.msra.mxu0 %v546_v56 }
 0x147   : > { %v996_v41 = vpop.f32.mrf.mxu0 }
 0x148   : > { %v440_v42 = vadd.f32 %v996_v41, %v878_v40 }
 0x149   : > { %v434_v43 = vpop.f32.mrf.mxu0 }
 0x14a   : > { %v435_v44 = vadd.f32 %v878_v40, %v434_v43 }
 0x14c   : > { %1183 = vtanh.f32 %v435_v44 }
 0x14d   : > { %1185 = vtanh.f32 %v440_v42 }
 0x159   : > { %v1184_v45 = vpop.eup %1183 }
 0x15a   : > { %v1186_v46 = vpop.eup %1185  ;;  %1029 = vmatprep.mubr.f32.mxu1 %v1184_v45 }
 0x15b   : > { %1030 = vmatmul.mubr.f32.vlgmr.msra.gmra.mxu1 %v1186_v46 }
 0x15c   : > { %1068 = vmatpush3.msra.mxu1 %v662_v57 }
 0x15d   : > { %1069 = vmatprep.subr.mxu1 %v661_v58 }
 0x15e   : > { %1070 = vmatpush3.msra.mxu1 %v661_v58 }
 0x15f   : > { %1071 = vmatprep.subr.mxu1 %v660_v59 }
 0x160   : > { %1072 = vmatpush3.msra.mxu1 %v660_v59 }
 0x161   : > { %1073 = vmatprep.subr.mxu1 %v659_v60 }
 0x162   : > { %1074 = vmatpush3.msra.mxu1 %v659_v60 }
 0x163   : > { %1075 = vmatprep.subr.mxu1 %v658_v61 }
 0x164   : > { %1076 = vmatpush3.msra.mxu1 %v658_v61 }
 0x165   : > { %1077 = vmatprep.subr.mxu1 %v657_v62 }
 0x166   : > { %1078 = vmatpush3.msra.mxu1 %v657_v62 }
 0x167   : > { %1079 = vmatprep.subr.mxu1 %v656_v6 }
 0x168   : > { %1080 = vmatpush3.msra.mxu1 %v656_v6 }
 0x169   : > { %1081 = vmatprep.subr.mxu1 %v655_v7 }
 0x16a   : > { %1082 = vmatpush3.msra.mxu1 %v655_v7 }
 0x16b   : > { %1083 = vmatprep.subr.mxu1 %v654_v8 }
 0x16c   : > { %1084 = vmatpush3.msra.mxu1 %v654_v8 }
 0x16d   : > { %1085 = vmatprep.subr.mxu1 %v653_v9 }
 0x16e   : > { %1086 = vmatpush3.msra.mxu1 %v653_v9 }
 0x16f   : > { %1087 = vmatprep.subr.mxu1 %v652_v10 }
 0x170   : > { %1088 = vmatpush3.msra.mxu1 %v652_v10 }
 0x171   : > { %1089 = vmatprep.subr.mxu1 %v651_v11 }
 0x172   : > { %1090 = vmatpush3.msra.mxu1 %v651_v11 }
 0x173   : > { %1091 = vmatprep.subr.mxu1 %v650_v12 }
 0x174   : > { %1092 = vmatpush3.msra.mxu1 %v650_v12 }
 0x175   : > { %1093 = vmatprep.subr.mxu1 %v649_v13 }
 0x176   : > { %1094 = vmatpush3.msra.mxu1 %v649_v13 }
 0x177   : > { %1095 = vmatprep.subr.mxu1 %v648_v14 }
 0x178   : > { %1096 = vmatpush3.msra.mxu1 %v648_v14 }
 0x179   : > { %1097 = vmatprep.subr.mxu1 %v647_v15 }
 0x17a   : > { %1098 = vmatpush3.msra.mxu1 %v647_v15 }
 0x21b   : > { %v1031_v0 = vpop.f32.mrf.mxu1 }
 0x21c   : > { %v540_v1 = vadd.f32 %v1031_v0, %v879_v63 }
 0x21d   : > { %v534_v2 = vpop.f32.mrf.mxu1 }
 0x21e   : > { %v535_v3 = vadd.f32 %v879_v63, %v534_v2 }
 0x220   : > { %1187 = vtanh.f32 %v535_v3 }
 0x221   : > { %1189 = vtanh.f32 %v540_v1 }
 0x22d   : > { %v1188_v4 = vpop.eup %1187 }
 0x22e   : > { %v1190_v5 = vpop.eup %1189  ;;  %1064 = vmatprep.mubr.f32.mxu0 %v1188_v4 }
 0x22f   : > { %1065 = vmatmul.mubr.f32.vlgmr.msra.gmra.mxu0 %v1190_v5 }
 0x2ef   : > { %v1066_v17 = vpop.f32.mrf.mxu0 }
 0x2f0   : > { %v642_v18 = vadd.f32 %v1066_v17, %v881_v16 }
 0x2f1   : > { %v636_v19 = vpop.f32.mrf.mxu0 }
 0x2f2   : > { %v637_v20 = vadd.f32 %v881_v16, %v636_v19 }
 0x2f4   : > { %1191 = vtanh.f32 %v637_v20 }
 0x2f5   : > { %1193 = vtanh.f32 %v642_v18 }
 0x301   : > { %v1192_v21 = vpop.eup %1191 }
 0x302   : > { %v1194_v22 = vpop.eup %1193  ;;  %1099 = vmatprep.mubr.f32.mxu1 %v1192_v21 }
 0x303   : > { %1100 = vmatmul.mubr.f32.vlgmr.msra.gmra.mxu1 %v1194_v22 }
 0x3c3   : > { %v1101_v24 = vpop.f32.mrf.mxu1 }
 0x3c4   : > { %v742_v25 = vadd.f32 %v1101_v24, %v882_v23 }
 0x3c5   : > { %v736_v26 = vpop.f32.mrf.mxu1 }
 0x3c6   : > { %746 = vst [vmem:[%s340_s22 + $0x8] sm:$0xff] %v742_v25  ;;  %v737_v27 = vadd.f32 %v882_v23, %v736_v26 }
 0x3c8   : > { %745 = vst [vmem:[%s340_s22] sm:$0xff] %v737_v27 }
 0x3c9   : > { %1314 = shalt.err (!%p1311_p10)
}
 0x3ca   : > { %s1315_s15 = scalar_lea.hbm %s1613_s30, 256  ;;  %s1319_s21 = scalar_lea.hbm %s1663_s7, 512 }
 0x3cb   : > { %p1316_p6 = scmp.ne.s32.totalorder %s1613_s30, %s1315_s15  ;;  %p1320_p3 = scmp.lt.s32.totalorder %s1613_s30, %s1663_s7 }
 0x3cc   : > { %p1321_p11 = scmp.lt.s32.totalorder %s1319_s21, %s1315_s15 }
 0x3cd   : > { %p1317_p4 = pnand %p1316_p6, %p1686_p1 }
 0x3ce   : > { %p1322_p5 = por %p1321_p11, %p1320_p3 }
 0x3cf   : > { %p1318_p8 = pneg %p1317_p4 }
 0x3d1   : > { %p1323_p7 = pnand %p1322_p5, %p1318_p8 }
 0x3d3   : > { %1326 = shalt.err (!%p1323_p7)
}
 0x3d4   : > { %s1382_s16 = smov 128   ;;  %s1383_s12 = smov 8  }
 0x3d5   : > { %1116 = dma.vmem_to_hbm [thread:$0]  (%p1686_p1), %s1608_s18, 256, %s1613_s30, %s748_s9, %s1382_s16, %s1382_s16, %s1383_s12  }
 0x3d6 PF: > { %s776_s1 = sand.u32 1, %s1361_s24   ;;  %p1687_p12 = scmp.ne.s32.totalorder %s1672_s8, 0 }
 0x3d7   : > { %p1688_p9 = scmp.ge.s32.totalorder %s1373_s27, 2  ;;  %s777_s28 = scalar_lea.sflag [#allocation4], %s776_s1 }
 0x3d9   : > { %p1133_p13 = pnand %p1688_p9, %p1687_p12 }
 0x3db   : > { %p1134_p0 = pneg %p1133_p13 }
 0x3dd   : > { %1356 = dma.done.wait (%p1134_p0), %s777_s28, 256  }
 0x3de   : > { %1358 = vsyncadd (%p1134_p0), %s777_s28, 4294967040  ;;  %p22_p2 = scmp.ge.s32.totalorder %s1513_s14, 4   ;;  %s1689_s24 = smov %s1365_s25 }
 0x3df   : > { %s1690_s25 = smov %s1369_s26  ;;  %s1691_s26 = smov %s1523_s17 }
 0x3e0   : > { %s1692_s27 = smov %s1513_s14  ;;  %24 = sbr.rel (!%p22_p2) target bundleno = 9 (0x9), region = 107 }
 0x3e5   :  { %782 = vsyncpa [#allocation3], 1 }
 0x3e6   :  { %784 = vsyncpa [#allocation3 + $0x1], 1 }
 0x3e7   :  { %785 = vsyncpa [#allocation6], 1 }
 0x3e8   :  { %786 = vsyncpa [#allocation9], 1 }
 0x3e9   :  { %787 = vsyncpa [#allocation4], 1 }
 0x3ea   :  { %789 = vsyncpa [#allocation4 + $0x1], 1 }

// kernel: tpu_custom_call.1
= control target key start
LH: loop header
LB: loop body
LE: loop exit
PB: predicated region body
PF: predicated region fallthrough
CT: control target
= control target key end

     0   :  { %s1656_s0 = inlined_call_operand.hbm [shape: f32[32,128], index: 0, kind: input, shape index: {}]   ;;  %s1657_s1 = inlined_call_operand.hbm [shape: f32[128,128], index: 1, kind: input, shape index: {}]   ;;  %s1658_s2 = inlined_call_operand.vmem [shape: f32[1,128], index: 2, kind: input, shape index: {}]   ;;  %s1659_s3 = inlined_call_operand.hbm [shape: f32[2,128,128], index: 3, kind: input, shape index: {}]   ;;  %s1660_s4 = inlined_call_operand.vmem [shape: f32[2,1,128], index: 4, kind: input, shape index: {}]   ;;  %s1661_s5 = inlined_call_operand.hbm [shape: f32[128,128], index: 5, kind: input, shape index: {}]   ;;  %s1662_s6 = inlined_call_operand.vmem [shape: f32[1,128], index: 6, kind: input, shape index: {}]   ;;  %s1663_s7 = inlined_call_operand.hbm [shape: f32[32,128], index: 7, kind: output, shape index: {}]  }
   0x1   :  { %1670 = sst [smem:[#allocation15_spill]] %s1657_s1 }
   0x2   :  { %12 = vsyncpa [#allocation3], 0 }
   0x3   :  { %14 = vsyncpa [#allocation3 + $0x1], 0 }
   0x4   :  { %15 = vsyncpa [#allocation6], 0 }
   0x5   :  { %16 = vsyncpa [#allocation9], 0 }
   0x6   :  { %17 = vsyncpa [#allocation4], 0 }
   0x7   :  { %19 = vsyncpa [#allocation4 + $0x1], 0  ;;  %s1424_s24 = smov 0   ;;  %s1426_s25 = smov 0  }
   0x8   :  { %s1428_s26 = smov 0   ;;  %s1430_s27 = smov 0  }
   0x9 LB: > { %s1445_s28 = sadd.s32 4294967295, %s1373_s27   ;;  %s863_s29 = sadd.s32 4294967294, %s1373_s27   ;;  %s1373_s27 = sphi %s1430_s27, %s1692_s27   ;;  %s1369_s26 = sphi %s1428_s26, %s1691_s26   ;;  %s1365_s25 = sphi %s1426_s25, %s1690_s25   ;;  %s1361_s24 = sphi %s1424_s24, %s1689_s24  }
   0xa   : > { %p45_p0 = scmp.ne.s32.totalorder %s1365_s25, %s1361_s24  ;;  %p1664_p1 = scmp.eq.s32.totalorder %s1445_s28, 0 }
   0xb   : > { %p195_p2 = scmp.eq.s32.totalorder %s1445_s28, 1  ;;  %p201_p3 = scmp.eq.s32.totalorder %s863_s29, 1 }
   0xc   : > { %p1454_p4 = por %p1664_p1, %p45_p0  ;;  %p864_p5 = scmp.ge.s32.totalorder %s1373_s27, 1 }
   0xd   : > { %p1459_p6 = por %p201_p3, %p45_p0  ;;  %p208_p7 = scmp.lt.s32.totalorder %s1373_s27, 3 }
   0xe   : > { %s1671_s30 = scalar_select %p1454_p4, 1, 0 }
   0xf   : > { %s1672_s8 = scalar_select %p1459_p6, 1, 0 }
  0x10   : > { %p1464_p8 = pnand %p864_p5, %p208_p7  ;;  %s1375_s10 = smov [#allocation5]  }
  0x11   : > { %s220_s11 = sshll.u32 %s1375_s10, 4  ;;  %s1376_s13 = smov [#allocation7]   ;;  %s221_s11 = int_to_ptr.vmem [resolvable:$true] %s220_s11 }
  0x12   : > { %s1673_s9 = scalar_select %p1464_p8, 1, 0 }
  0x13   : > { %p1118_p9 = pneg %p1464_p8  ;;  %s236_s14 = sshll.u32 %s1376_s13, 4  ;;  %s237_s14 = int_to_ptr.vmem [resolvable:$true] %s236_s14 }
  0x14   : > { %s1377_s15 = smov [#allocation8]   ;;  %s1206_s17 = scalar_lea.vmem %s221_s11, 2048 }
  0x15   : > { %p1473_p11 = pnand %p1118_p9, %p1664_p1  ;;  %s252_s16 = sshll.u32 %s1377_s15, 4  ;;  %s253_s16 = int_to_ptr.vmem [resolvable:$true] %s252_s16 }
  0x16   : > { %p1207_p13 = scmp.ne.s32.totalorder %s221_s11, %s1206_s17  ;;  %p1214_p5 = scmp.lt.s32.totalorder %s221_s11, %s221_s11 }
  0x17   : > { %p1197_p12 = pneg %p1473_p11  ;;  %p1215_p7 = scmp.lt.s32.totalorder %s1206_s17, %s1206_s17 }
  0x19   : > { %p1209_p0 = pnand %p1207_p13, %p1197_p12  ;;  %p1216_p9 = por %p1215_p7, %p1214_p5 }
  0x1b   : > { %p1210_p3 = pneg %p1209_p0 }
  0x1d   : > { %p1217_p10 = pnand %p1216_p9, %p1210_p3 }
  0x1f   : > { %1220 = shalt.err (!%p1217_p10)
}
  0x20   : > { %s1665_s18 = smov 128   ;;  %s1666_s19 = smov 8  }
  0x21   : > { %s1675_s1 = sld [smem:[#allocation15_spill]]  ;;  %s1232_s22 = scalar_lea.vmem %s237_s14, 4096 }
  0x22   : > { %p1233_p13 = scmp.ne.s32.totalorder %s237_s14, %s1232_s22  ;;  %p1240_p3 = scmp.lt.s32.totalorder %s237_s14, %s237_s14 }
  0x23   : > { %p1241_p10 = scmp.lt.s32.totalorder %s1232_s22, %s1232_s22 }
  0x24   : > { %p1235_p0 = pnand %p1233_p13, %p1197_p12 }
  0x25   : > { %p1242_p7 = por %p1241_p10, %p1240_p3 }
  0x26   : > { %p1236_p5 = pneg %p1235_p0 }
  0x27   : > { %1121 = dma.hbm_to_vmem [thread:$0]  (!%p1473_p11), %s1675_s1, 2048, %s221_s11, [#allocation6], %s1665_s18, %s1665_s18, %s1666_s19  }
  0x28   : > { %p1243_p9 = pnand %p1242_p7, %p1236_p5 }
  0x2a   : > { %1246 = shalt.err (!%p1243_p9)
}
  0x2b   : > { %1124 = dma.hbm_to_vmem [thread:$0]  (!%p1473_p11), %s1659_s3, 4096, %s237_s14, [#allocation6], %s1665_s18, %s1665_s18, %s1666_s19  }
  0x2c   : > { %s1258_s10 = scalar_lea.vmem %s253_s16, 2048  ;;  %p1266_p3 = scmp.lt.s32.totalorder %s253_s16, %s253_s16 }
  0x2d   : > { %p1259_p1 = scmp.ne.s32.totalorder %s253_s16, %s1258_s10  ;;  %p1267_p5 = scmp.lt.s32.totalorder %s1258_s10, %s1258_s10 }
  0x2f   : > { %p1261_p13 = pnand %p1259_p1, %p1197_p12  ;;  %p1268_p10 = por %p1267_p5, %p1266_p3 }
  0x31   : > { %p1262_p0 = pneg %p1261_p13 }
  0x33   : > { %p1269_p7 = pnand %p1268_p10, %p1262_p0 }
  0x35   : > { %1272 = shalt.err (!%p1269_p7)
}
  0x36   : > { %1127 = dma.hbm_to_vmem [thread:$0]  (!%p1473_p11), %s1661_s5, 2048, %s253_s16, [#allocation9], %s1665_s18, %s1665_s18, %s1666_s19  }
  0x37   : > { %s1513_s14 = sadd.s32 1, %s1373_s27   ;;  %s32_s15 = sadd.s32 1, %s1369_s26 }
  0x38   : > { %s29_s12 = ssub.s32 %s1373_s27, %s1513_s14  ;;  %p39_p12 = scmp.ne.s32.totalorder %s1369_s26, %s1365_s25 }
  0x39   : > { %p30_p1 = scmp.eq.s32.totalorder %s29_s12, 0  ;;  %p40_p9 = scmp.eq.s32.totalorder %s1373_s27, 0 }
  0x3a   : > { %p1139_p13 = scmp.lt.s32.totalorder %s1373_s27, 2  ;;  %p1527_p3 = por %p195_p2, %p39_p12 }
  0x3b   : > { %s1523_s17 = scalar_select %p30_p1, %s1369_s26, %s32_s15  }
  0x3c   : > { %p41_p0 = por %p40_p9, %p39_p12  ;;  %s269_s21 = sand.u32 1, %s1369_s26  }
  0x3d   : > { %s1676_s20 = scalar_select %p1527_p3, 1, 0 }
  0x3e   : > { %s888_s22 = sshll.u32 %s1373_s27, 8  ;;  %s869_s16 = sshll.u32 %s269_s21, 4 }
  0x3f   : > { %s1536_s10 = scalar_lea.hbm %s1656_s0, %s888_s22  ;;  %s273_s11 = scalar_lea.vmem [#allocation2], %s869_s16 }
  0x40   : > { %s280_s13 = sshll.u32 %s273_s11, 4  ;;  %p1538_p11 = pnand %p1139_p13, %p41_p0  ;;  %s1542_s13 = int_to_ptr.vmem [resolvable:$true] %s280_s13 }
  0x41   : > { %s1544_s15 = scalar_lea.sflag [#allocation3], %s269_s21  ;;  %s1273_s18 = scalar_lea.hbm %s1536_s10, 256 }
  0x42   : > { %p1274_p2 = scmp.ne.s32.totalorder %s1536_s10, %s1273_s18  ;;  %p1275_p5 = pneg %p1538_p11 }
  0x43   : > { %s1278_s16 = scalar_lea.hbm %s1656_s0, 512  ;;  %p1279_p1 = scmp.lt.s32.totalorder %s1536_s10, %s1656_s0 }
  0x44   : > { %p1276_p10 = pnand %p1275_p5, %p1274_p2  ;;  %p1280_p12 = scmp.lt.s32.totalorder %s1278_s16, %s1273_s18 }
  0x46   : > { %p1277_p7 = pneg %p1276_p10  ;;  %p1281_p9 = por %p1280_p12, %p1279_p1 }
  0x48   : > { %p1282_p13 = pnand %p1281_p9, %p1277_p7 }
  0x4a   : > { %1285 = shalt.err (!%p1282_p13)
}
  0x4b   : > { %s1286_s21 = scalar_lea.vmem %s1542_s13, 256  ;;  %s1380_s19 = smov [#allocation2]  }
  0x4c   : > { %p1287_p0 = scmp.ne.s32.totalorder %s1542_s13, %s1286_s21  ;;  %s1291_s1 = sshll.u32 %s1380_s19, 4  ;;  %s1292_s1 = int_to_ptr.vmem [resolvable:$false] %s1291_s1 }
  0x4d   : > { %s1293_s22 = scalar_lea.vmem %s1292_s1, 512  ;;  %p1294_p10 = scmp.lt.s32.totalorder %s1542_s13, %s1292_s1 }
  0x4e   : > { %p1289_p6 = pnand %p1287_p0, %p1275_p5  ;;  %p1295_p3 = scmp.lt.s32.totalorder %s1293_s22, %s1286_s21 }
  0x50   : > { %p1290_p2 = pneg %p1289_p6  ;;  %p1296_p4 = por %p1295_p3, %p1294_p10 }
  0x52   : > { %p1297_p8 = pnand %p1296_p4, %p1290_p2 }
  0x54   : > { %1300 = shalt.err (!%p1297_p8)
}
  0x55   : > { %s1678_s18 = smov 8   ;;  %s1679_s23 = smov 128  }
  0x56   : > { %1131 = dma.hbm_to_vmem [thread:$0]  (!%p1538_p11), %s1536_s10, 256, %s1542_s13, %s1544_s15, %s1679_s23, %s1679_s23, %s1678_s18  }
  0x57   : > { %p1680_p6 = scmp.ne.s32.totalorder %s1673_s9, 0 }
  0x58   : > { %s1571_s19 = sand.u32 (!%p1680_p6), 1, %s1365_s25   ;;  %p1681_p4 = scmp.ne.s32.totalorder (!%p1680_p6), %s1671_s30, 0 }
  0x59   : > { %292 = sbr.rel (%p1680_p6) target bundleno = 982 (0x3d6), region = 48  ;;  %s873_s1 = sshll.u32 (!%p1680_p6), %s1571_s19, 4 }
  0x5a   : > { %s295_s16 = scalar_lea.sflag (!%p1680_p6), [#allocation3], %s1571_s19  ;;  %s1577_s12 = scalar_lea.vmem (!%p1680_p6), [#allocation2], %s873_s1 }
  0x5e   : > { %1344 = dma.done.wait (%p1681_p4), %s295_s16, 256  }
  0x5f   : > { %1346 = vsyncadd (%p1681_p4), %s295_s16, 4294967040  ;;  %p1682_p8 = scmp.eq.s32.totalorder %s1445_s28, 0 }
  0x61   : > { %1348 = dma.done.wait (%p1682_p8), [#allocation6], 6144   ;;  %p1683_p3 = pmov %p1682_p8 }
  0x63   : > { %1350 = vsyncadd (%p1683_p3), [#allocation6], 4294961152  ;;  %p1684_p11 = pmov %p1683_p3 }
  0x64   : > { %p1685_p5 = pmov %p1683_p3 }
  0x65   : > { %1352 = dma.done.wait (%p1684_p11), [#allocation9], 2048  }
  0x66   : > { %1354 = vsyncadd (%p1685_p5), [#allocation9], 4294965248  ;;  %v360_v0 = vld [vmem:[#allocation5 + $0x78] sm:$0xff]  ;;  %v359_v1 = vld [vmem:[#allocation5 + $0x70] sm:$0xff]  ;;  %s340_s22 = scalar_lea.vmem [#allocation10], %s873_s1  ;;  %s889_s23 = sshll.u32 %s1445_s28, 8 }
  0x67   : > { %962 = vmatprep.subr.mxu0 %v360_v0  ;;  %v358_v2 = vld [vmem:[#allocation5 + $0x68] sm:$0xff]  ;;  %v357_v3 = vld [vmem:[#allocation5 + $0x60] sm:$0xff]  ;;  %v356_v5 = vld [vmem:[#allocation5 + $0x58] sm:$0xff]  ;;  %s761_s18 = sshll.u32 %s340_s22, 4  ;;  %s1613_s30 = scalar_lea.hbm %s1663_s7, %s889_s23  ;;  %s1608_s18 = int_to_ptr.vmem [resolvable:$true] %s761_s18 }
  0x68   : > { %963 = vmatpush3.msra.mxu0 %v360_v0  ;;  %v343_v4 = vld [vmem:[%s1577_s12] sm:$0xff]  ;;  %v460_v6 = vld [vmem:[#allocation7 + $0x78] sm:$0xff]  ;;  %v458_v9 = vld [vmem:[#allocation7 + $0x68] sm:$0xff]  ;;  %s748_s9 = scalar_lea.sflag [#allocation4], %s1571_s19  ;;  %s1301_s1 = scalar_lea.vmem %s1608_s18, 256 }
  0x69   : > { %964 = vmatprep.subr.mxu0 %v359_v1  ;;  %994 = vmatprep.mubr.f32.mxu0 %v343_v4  ;;  %v459_v7 = vld [vmem:[#allocation7 + $0x70] sm:$0xff]  ;;  %v354_v10 = vld [vmem:[#allocation5 + $0x48] sm:$0xff]  ;;  %v457_v11 = vld [vmem:[#allocation7 + $0x60] sm:$0xff]  ;;  %p1302_p7 = scmp.ne.s32.totalorder %s1608_s18, %s1301_s1  ;;  %p1686_p1 = scmp.ne.s32.totalorder %s1676_s20, 0 }
  0x6a   : > { %965 = vmatpush3.msra.mxu0 %v359_v1  ;;  %997 = vmatprep.subr.mxu1 %v460_v6  ;;  %v355_v8 = vld [vmem:[#allocation5 + $0x50] sm:$0xff]  ;;  %v353_v12 = vld [vmem:[#allocation5 + $0x40] sm:$0xff]  ;;  %v456_v13 = vld [vmem:[#allocation7 + $0x58] sm:$0xff]  ;;  %s1381_s28 = smov [#allocation10]  }
  0x6b   : > { %966 = vmatprep.subr.mxu0 %v358_v2  ;;  %998 = vmatpush3.msra.mxu1 %v460_v6  ;;  %v352_v14 = vld [vmem:[#allocation5 + $0x38] sm:$0xff]  ;;  %v455_v15 = vld [vmem:[#allocation7 + $0x50] sm:$0xff]  ;;  %v350_v17 = vld [vmem:[#allocation5 + $0x28] sm:$0xff]  ;;  %p1303_p12 = pnand %p1302_p7, %p1686_p1  ;;  %s1305_s10 = sshll.u32 %s1381_s28, 4  ;;  %s1306_s10 = int_to_ptr.vmem [resolvable:$false] %s1305_s10 }
  0x6c   : > { %967 = vmatpush3.msra.mxu0 %v358_v2  ;;  %999 = vmatprep.subr.mxu1 %v459_v7  ;;  %v351_v16 = vld [vmem:[#allocation5 + $0x30] sm:$0xff]  ;;  %v349_v18 = vld [vmem:[#allocation5 + $0x20] sm:$0xff]  ;;  %v348_v19 = vld [vmem:[#allocation5 + $0x18] sm:$0xff]  ;;  %s1307_s13 = scalar_lea.vmem %s1306_s10, 512  ;;  %p1308_p13 = scmp.lt.s32.totalorder %s1608_s18, %s1306_s10 }
  0x6d   : > { %968 = vmatprep.subr.mxu0 %v357_v3  ;;  %1000 = vmatpush3.msra.mxu1 %v459_v7  ;;  %v347_v20 = vld [vmem:[#allocation5 + $0x10] sm:$0xff]  ;;  %v346_v21 = vld [vmem:[#allocation5 + $0x8] sm:$0xff]  ;;  %v345_v22 = vld [vmem:[#allocation5] sm:$0xff]  ;;  %p1304_p9 = pneg %p1303_p12  ;;  %p1309_p0 = scmp.lt.s32.totalorder %s1307_s13, %s1301_s1 }
  0x6e   : > { %969 = vmatpush3.msra.mxu0 %v357_v3  ;;  %1001 = vmatprep.subr.mxu1 %v458_v9  ;;  %v344_v23 = vld [vmem:[%s1577_s12 + $0x8] sm:$0xff]  ;;  %v453_v25 = vld [vmem:[#allocation7 + $0x40] sm:$0xff]  ;;  %v451_v27 = vld [vmem:[#allocation7 + $0x30] sm:$0xff] }
  0x6f   : > { %970 = vmatprep.subr.mxu0 %v356_v5  ;;  %1002 = vmatpush3.msra.mxu1 %v458_v9  ;;  %v454_v24 = vld [vmem:[#allocation7 + $0x48] sm:$0xff]  ;;  %v452_v26 = vld [vmem:[#allocation7 + $0x38] sm:$0xff]  ;;  %v449_v29 = vld [vmem:[#allocation7 + $0x20] sm:$0xff]  ;;  %p1310_p2 = por %p1309_p0, %p1308_p13 }
  0x70   : > { %971 = vmatpush3.msra.mxu0 %v356_v5  ;;  %1003 = vmatprep.subr.mxu1 %v457_v11  ;;  %v450_v28 = vld [vmem:[#allocation7 + $0x28] sm:$0xff]  ;;  %v448_v30 = vld [vmem:[#allocation7 + $0x18] sm:$0xff]  ;;  %v447_v31 = vld [vmem:[#allocation7 + $0x10] sm:$0xff] }
  0x71   : > { %972 = vmatprep.subr.mxu0 %v355_v8  ;;  %1004 = vmatpush3.msra.mxu1 %v457_v11  ;;  %v446_v32 = vld [vmem:[#allocation7 + $0x8] sm:$0xff]  ;;  %v445_v33 = vld [vmem:[#allocation7] sm:$0xff]  ;;  %v561_v34 = vld [vmem:[#allocation7 + $0xf8] sm:$0xff]  ;;  %p1311_p10 = pnand %p1310_p2, %p1304_p9 }
  0x72   : > { %973 = vmatpush3.msra.mxu0 %v355_v8  ;;  %1005 = vmatprep.subr.mxu1 %v456_v13  ;;  %v560_v35 = vld [vmem:[#allocation7 + $0xf0] sm:$0xff]  ;;  %v559_v36 = vld [vmem:[#allocation7 + $0xe8] sm:$0xff]  ;;  %v558_v37 = vld [vmem:[#allocation7 + $0xe0] sm:$0xff] }
  0x73   : > { %974 = vmatprep.subr.mxu0 %v354_v10  ;;  %1006 = vmatpush3.msra.mxu1 %v456_v13  ;;  %v557_v38 = vld [vmem:[#allocation7 + $0xd8] sm:$0xff]  ;;  %v556_v39 = vld [vmem:[#allocation7 + $0xd0] sm:$0xff]  ;;  %v878_v40 = vld [vmem:[%s1658_s2] ss:$0 sm:$0xff] }
  0x74   : > { %975 = vmatpush3.msra.mxu0 %v354_v10  ;;  %1007 = vmatprep.subr.mxu1 %v455_v15  ;;  %v555_v47 = vld [vmem:[#allocation7 + $0xc8] sm:$0xff]  ;;  %v554_v48 = vld [vmem:[#allocation7 + $0xc0] sm:$0xff]  ;;  %v553_v49 = vld [vmem:[#allocation7 + $0xb8] sm:$0xff] }
  0x75   : > { %976 = vmatprep.subr.mxu0 %v353_v12  ;;  %1008 = vmatpush3.msra.mxu1 %v455_v15  ;;  %v552_v50 = vld [vmem:[#allocation7 + $0xb0] sm:$0xff]  ;;  %v551_v51 = vld [vmem:[#allocation7 + $0xa8] sm:$0xff]  ;;  %v550_v52 = vld [vmem:[#allocation7 + $0xa0] sm:$0xff] }
  0x76   : > { %977 = vmatpush3.msra.mxu0 %v353_v12  ;;  %1009 = vmatprep.subr.mxu1 %v454_v24  ;;  %v549_v53 = vld [vmem:[#allocation7 + $0x98] sm:$0xff]  ;;  %v548_v54 = vld [vmem:[#allocation7 + $0x90] sm:$0xff]  ;;  %v547_v55 = vld [vmem:[#allocation7 + $0x88] sm:$0xff] }
  0x77   : > { %978 = vmatprep.subr.mxu0 %v352_v14  ;;  %1010 = vmatpush3.msra.mxu1 %v454_v24  ;;  %v546_v56 = vld [vmem:[#allocation7 + $0x80] sm:$0xff]  ;;  %v662_v57 = vld [vmem:[#allocation8 + $0x78] sm:$0xff]  ;;  %v661_v58 = vld [vmem:[#allocation8 + $0x70] sm:$0xff] }
  0x78   : > { %979 = vmatpush3.msra.mxu0 %v352_v14  ;;  %1011 = vmatprep.subr.mxu1 %v453_v25  ;;  %v660_v59 = vld [vmem:[#allocation8 + $0x68] sm:$0xff]  ;;  %v659_v60 = vld [vmem:[#allocation8 + $0x60] sm:$0xff]  ;;  %v658_v61 = vld [vmem:[#allocation8 + $0x58] sm:$0xff] }
  0x79   : > { %980 = vmatprep.subr.mxu0 %v351_v16  ;;  %1012 = vmatpush3.msra.mxu1 %v453_v25  ;;  %v657_v62 = vld [vmem:[#allocation8 + $0x50] sm:$0xff]  ;;  %v879_v63 = vld [vmem:[%s1660_s4] ss:$0 sm:$0xff]  ;;  %v656_v6 = vld [vmem:[#allocation8 + $0x48] sm:$0xff] }
  0x7a   : > { %981 = vmatpush3.msra.mxu0 %v351_v16  ;;  %1013 = vmatprep.subr.mxu1 %v452_v26  ;;  %v655_v7 = vld [vmem:[#allocation8 + $0x40] sm:$0xff]  ;;  %v654_v8 = vld [vmem:[#allocation8 + $0x38] sm:$0xff]  ;;  %v653_v9 = vld [vmem:[#allocation8 + $0x30] sm:$0xff] }
  0x7b   : > { %982 = vmatprep.subr.mxu0 %v350_v17  ;;  %1014 = vmatpush3.msra.mxu1 %v452_v26  ;;  %v652_v10 = vld [vmem:[#allocation8 + $0x28] sm:$0xff]  ;;  %v651_v11 = vld [vmem:[#allocation8 + $0x20] sm:$0xff]  ;;  %v650_v12 = vld [vmem:[#allocation8 + $0x18] sm:$0xff] }
  0x7c   : > { %983 = vmatpush3.msra.mxu0 %v350_v17  ;;  %1015 = vmatprep.subr.mxu1 %v451_v27  ;;  %v649_v13 = vld [vmem:[#allocation8 + $0x10] sm:$0xff]  ;;  %v648_v14 = vld [vmem:[#allocation8 + $0x8] sm:$0xff]  ;;  %v647_v15 = vld [vmem:[#allocation8] sm:$0xff] }
  0x7d   : > { %984 = vmatprep.subr.mxu0 %v349_v18  ;;  %1016 = vmatpush3.msra.mxu1 %v451_v27  ;;  %v881_v16 = vld [vmem:[%s1660_s4 + $0x1] ss:$0 sm:$0xff] }
  0x7e   : > { %985 = vmatpush3.msra.mxu0 %v349_v18  ;;  %1017 = vmatprep.subr.mxu1 %v450_v28 }
  0x7f   : > { %986 = vmatprep.subr.mxu0 %v348_v19  ;;  %1018 = vmatpush3.msra.mxu1 %v450_v28 }
  0x80   : > { %987 = vmatpush3.msra.mxu0 %v348_v19  ;;  %1019 = vmatprep.subr.mxu1 %v449_v29 }
  0x81   : > { %988 = vmatprep.subr.mxu0 %v347_v20  ;;  %1020 = vmatpush3.msra.mxu1 %v449_v29 }
  0x82   : > { %989 = vmatpush3.msra.mxu0 %v347_v20  ;;  %1021 = vmatprep.subr.mxu1 %v448_v30 }
  0x83   : > { %990 = vmatprep.subr.mxu0 %v346_v21  ;;  %1022 = vmatpush3.msra.mxu1 %v448_v30 }
  0x84   : > { %991 = vmatpush3.msra.mxu0 %v346_v21  ;;  %1023 = vmatprep.subr.mxu1 %v447_v31 }
  0x85   : > { %992 = vmatprep.subr.mxu0 %v345_v22  ;;  %1024 = vmatpush3.msra.mxu1 %v447_v31 }
  0x86   : > { %993 = vmatpush3.msra.mxu0 %v345_v22  ;;  %1025 = vmatprep.subr.mxu1 %v446_v32 }
  0x87   : > { %995 = vmatmul.mubr.f32.vlgmr.msra.gmra.mxu0 %v344_v23  ;;  %1026 = vmatpush3.msra.mxu1 %v446_v32  ;;  %v882_v23 = vld [vmem:[%s1662_s6] ss:$0 sm:$0xff] }
  0x88   : > { %1027 = vmatprep.subr.mxu1 %v445_v33  ;;  %1032 = vmatprep.subr.mxu0 %v561_v34 }
  0x89   : > { %1028 = vmatpush3.msra.mxu1 %v445_v33  ;;  %1033 = vmatpush3.msra.mxu0 %v561_v34 }
  0x8a   : > { %1034 = vmatprep.subr.mxu0 %v560_v35  ;;  %1067 = vmatprep.subr.mxu1 %v662_v57 }
  0x8b   : > { %1035 = vmatpush3.msra.mxu0 %v560_v35 }
  0x8c   : > { %1036 = vmatprep.subr.mxu0 %v559_v36 }
  0x8d   : > { %1037 = vmatpush3.msra.mxu0 %v559_v36 }
  0x8e   : > { %1038 = vmatprep.subr.mxu0 %v558_v37 }
  0x8f   : > { %1039 = vmatpush3.msra.mxu0 %v558_v37 }
  0x90   : > { %1040 = vmatprep.subr.mxu0 %v557_v38 }
  0x91   : > { %1041 = vmatpush3.msra.mxu0 %v557_v38 }
  0x92   : > { %1042 = vmatprep.subr.mxu0 %v556_v39 }
  0x93   : > { %1043 = vmatpush3.msra.mxu0 %v556_v39 }
  0x94   : > { %1044 = vmatprep.subr.mxu0 %v555_v47 }
  0x95   : > { %1045 = vmatpush3.msra.mxu0 %v555_v47 }
  0x96   : > { %1046 = vmatprep.subr.mxu0 %v554_v48 }
  0x97   : > { %1047 = vmatpush3.msra.mxu0 %v554_v48 }
  0x98   : > { %1048 = vmatprep.subr.mxu0 %v553_v49 }
  0x99   : > { %1049 = vmatpush3.msra.mxu0 %v553_v49 }
  0x9a   : > { %1050 = vmatprep.subr.mxu0 %v552_v50 }
  0x9b   : > { %1051 = vmatpush3.msra.mxu0 %v552_v50 }
  0x9c   : > { %1052 = vmatprep.subr.mxu0 %v551_v51 }
  0x9d   : > { %1053 = vmatpush3.msra.mxu0 %v551_v51 }
  0x9e   : > { %1054 = vmatprep.subr.mxu0 %v550_v52 }
  0x9f   : > { %1055 = vmatpush3.msra.mxu0 %v550_v52 }
  0xa0   : > { %1056 = vmatprep.subr.mxu0 %v549_v53 }
  0xa1   : > { %1057 = vmatpush3.msra.mxu0 %v549_v53 }
  0xa2   : > { %1058 = vmatprep.subr.mxu0 %v548_v54 }
  0xa3   : > { %1059 = vmatpush3.msra.mxu0 %v548_v54 }
  0xa4   : > { %1060 = vmatprep.subr.mxu0 %v547_v55 }
  0xa5   : > { %1061 = vmatpush3.msra.mxu0 %v547_v55 }
  0xa6   : > { %1062 = vmatprep.subr.mxu0 %v546_v56 }
  0xa7   : > { %1063 = vmatpush3.msra.mxu0 %v546_v56 }
 0x147   : > { %v996_v41 = vpop.f32.mrf.mxu0 }
 0x148   : > { %v440_v42 = vadd.f32 %v996_v41, %v878_v40 }
 0x149   : > { %v434_v43 = vpop.f32.mrf.mxu0 }
 0x14a   : > { %v435_v44 = vadd.f32 %v878_v40, %v434_v43 }
 0x14c   : > { %1183 = vtanh.f32 %v435_v44 }
 0x14d   : > { %1185 = vtanh.f32 %v440_v42 }
 0x159   : > { %v1184_v45 = vpop.eup %1183 }
 0x15a   : > { %v1186_v46 = vpop.eup %1185  ;;  %1029 = vmatprep.mubr.f32.mxu1 %v1184_v45 }
 0x15b   : > { %1030 = vmatmul.mubr.f32.vlgmr.msra.gmra.mxu1 %v1186_v46 }
 0x15c   : > { %1068 = vmatpush3.msra.mxu1 %v662_v57 }
 0x15d   : > { %1069 = vmatprep.subr.mxu1 %v661_v58 }
 0x15e   : > { %1070 = vmatpush3.msra.mxu1 %v661_v58 }
 0x15f   : > { %1071 = vmatprep.subr.mxu1 %v660_v59 }
 0x160   : > { %1072 = vmatpush3.msra.mxu1 %v660_v59 }
 0x161   : > { %1073 = vmatprep.subr.mxu1 %v659_v60 }
 0x162   : > { %1074 = vmatpush3.msra.mxu1 %v659_v60 }
 0x163   : > { %1075 = vmatprep.subr.mxu1 %v658_v61 }
 0x164   : > { %1076 = vmatpush3.msra.mxu1 %v658_v61 }
 0x165   : > { %1077 = vmatprep.subr.mxu1 %v657_v62 }
 0x166   : > { %1078 = vmatpush3.msra.mxu1 %v657_v62 }
 0x167   : > { %1079 = vmatprep.subr.mxu1 %v656_v6 }
 0x168   : > { %1080 = vmatpush3.msra.mxu1 %v656_v6 }
 0x169   : > { %1081 = vmatprep.subr.mxu1 %v655_v7 }
 0x16a   : > { %1082 = vmatpush3.msra.mxu1 %v655_v7 }
 0x16b   : > { %1083 = vmatprep.subr.mxu1 %v654_v8 }
 0x16c   : > { %1084 = vmatpush3.msra.mxu1 %v654_v8 }
 0x16d   : > { %1085 = vmatprep.subr.mxu1 %v653_v9 }
 0x16e   : > { %1086 = vmatpush3.msra.mxu1 %v653_v9 }
 0x16f   : > { %1087 = vmatprep.subr.mxu1 %v652_v10 }
 0x170   : > { %1088 = vmatpush3.msra.mxu1 %v652_v10 }
 0x171   : > { %1089 = vmatprep.subr.mxu1 %v651_v11 }
 0x172   : > { %1090 = vmatpush3.msra.mxu1 %v651_v11 }
 0x173   : > { %1091 = vmatprep.subr.mxu1 %v650_v12 }
 0x174   : > { %1092 = vmatpush3.msra.mxu1 %v650_v12 }
 0x175   : > { %1093 = vmatprep.subr.mxu1 %v649_v13 }
 0x176   : > { %1094 = vmatpush3.msra.mxu1 %v649_v13 }
 0x177   : > { %1095 = vmatprep.subr.mxu1 %v648_v14 }
 0x178   : > { %1096 = vmatpush3.msra.mxu1 %v648_v14 }
 0x179   : > { %1097 = vmatprep.subr.mxu1 %v647_v15 }
 0x17a   : > { %1098 = vmatpush3.msra.mxu1 %v647_v15 }
 0x21b   : > { %v1031_v0 = vpop.f32.mrf.mxu1 }
 0x21c   : > { %v540_v1 = vadd.f32 %v1031_v0, %v879_v63 }
 0x21d   : > { %v534_v2 = vpop.f32.mrf.mxu1 }
 0x21e   : > { %v535_v3 = vadd.f32 %v879_v63, %v534_v2 }
 0x220   : > { %1187 = vtanh.f32 %v535_v3 }
 0x221   : > { %1189 = vtanh.f32 %v540_v1 }
 0x22d   : > { %v1188_v4 = vpop.eup %1187 }
 0x22e   : > { %v1190_v5 = vpop.eup %1189  ;;  %1064 = vmatprep.mubr.f32.mxu0 %v1188_v4 }
 0x22f   : > { %1065 = vmatmul.mubr.f32.vlgmr.msra.gmra.mxu0 %v1190_v5 }
 0x2ef   : > { %v1066_v17 = vpop.f32.mrf.mxu0 }
 0x2f0   : > { %v642_v18 = vadd.f32 %v1066_v17, %v881_v16 }
 0x2f1   : > { %v636_v19 = vpop.f32.mrf.mxu0 }
 0x2f2   : > { %v637_v20 = vadd.f32 %v881_v16, %v636_v19 }
 0x2f4   : > { %1191 = vtanh.f32 %v637_v20 }
 0x2f5   : > { %1193 = vtanh.f32 %v642_v18 }
 0x301   : > { %v1192_v21 = vpop.eup %1191 }
 0x302   : > { %v1194_v22 = vpop.eup %1193  ;;  %1099 = vmatprep.mubr.f32.mxu1 %v1192_v21 }
 0x303   : > { %1100 = vmatmul.mubr.f32.vlgmr.msra.gmra.mxu1 %v1194_v22 }
 0x3c3   : > { %v1101_v24 = vpop.f32.mrf.mxu1 }
 0x3c4   : > { %v742_v25 = vadd.f32 %v1101_v24, %v882_v23 }
 0x3c5   : > { %v736_v26 = vpop.f32.mrf.mxu1 }
 0x3c6   : > { %746 = vst [vmem:[%s340_s22 + $0x8] sm:$0xff] %v742_v25  ;;  %v737_v27 = vadd.f32 %v882_v23, %v736_v26 }
 0x3c8   : > { %745 = vst [vmem:[%s340_s22] sm:$0xff] %v737_v27 }
 0x3c9   : > { %1314 = shalt.err (!%p1311_p10)
}
 0x3ca   : > { %s1315_s15 = scalar_lea.hbm %s1613_s30, 256  ;;  %s1319_s21 = scalar_lea.hbm %s1663_s7, 512 }
 0x3cb   : > { %p1316_p6 = scmp.ne.s32.totalorder %s1613_s30, %s1315_s15  ;;  %p1320_p3 = scmp.lt.s32.totalorder %s1613_s30, %s1663_s7 }
 0x3cc   : > { %p1321_p11 = scmp.lt.s32.totalorder %s1319_s21, %s1315_s15 }
 0x3cd   : > { %p1317_p4 = pnand %p1316_p6, %p1686_p1 }
 0x3ce   : > { %p1322_p5 = por %p1321_p11, %p1320_p3 }
 0x3cf   : > { %p1318_p8 = pneg %p1317_p4 }
 0x3d1   : > { %p1323_p7 = pnand %p1322_p5, %p1318_p8 }
 0x3d3   : > { %1326 = shalt.err (!%p1323_p7)
}
 0x3d4   : > { %s1382_s16 = smov 128   ;;  %s1383_s12 = smov 8  }
 0x3d5   : > { %1116 = dma.vmem_to_hbm [thread:$0]  (%p1686_p1), %s1608_s18, 256, %s1613_s30, %s748_s9, %s1382_s16, %s1382_s16, %s1383_s12  }
 0x3d6 PF: > { %s776_s1 = sand.u32 1, %s1361_s24   ;;  %p1687_p12 = scmp.ne.s32.totalorder %s1672_s8, 0 }
 0x3d7   : > { %p1688_p9 = scmp.ge.s32.totalorder %s1373_s27, 2  ;;  %s777_s28 = scalar_lea.sflag [#allocation4], %s776_s1 }
 0x3d9   : > { %p1133_p13 = pnand %p1688_p9, %p1687_p12 }
 0x3db   : > { %p1134_p0 = pneg %p1133_p13 }
 0x3dd   : > { %1356 = dma.done.wait (%p1134_p0), %s777_s28, 256  }
 0x3de   : > { %1358 = vsyncadd (%p1134_p0), %s777_s28, 4294967040  ;;  %p22_p2 = scmp.ge.s32.totalorder %s1513_s14, 4   ;;  %s1689_s24 = smov %s1365_s25 }
 0x3df   : > { %s1690_s25 = smov %s1369_s26  ;;  %s1691_s26 = smov %s1523_s17 }
 0x3e0   : > { %s1692_s27 = smov %s1513_s14  ;;  %24 = sbr.rel (!%p22_p2) target bundleno = 9 (0x9), region = 107 }
 0x3e5   :  { %782 = vsyncpa [#allocation3], 1 }
 0x3e6   :  { %784 = vsyncpa [#allocation3 + $0x1], 1 }
 0x3e7   :  { %785 = vsyncpa [#allocation6], 1 }
 0x3e8   :  { %786 = vsyncpa [#allocation9], 1 }
 0x3e9   :  { %787 = vsyncpa [#allocation4], 1 }
 0x3ea   :  { %789 = vsyncpa [#allocation4 + $0x1], 1 }

</bundles_post_ra>
